<compile_context>
chip_gen: v6e
topology: v6e:2x2x1
jax: 0.10.0
libtpu: 0.0.40
codegen_flags: <defaults>
</compile_context>

<pallas_src>
import functools

import jax
import jax.numpy as jnp
from jax import lax
from jax.experimental import pallas as pl
from jax.experimental.pallas import tpu as pltpu


# ----------------------------------------------------------------------------
# Pallas kernel: one EncoderBlock layer for one batch element.
# Grid = (batch, layer); x is carried in the output block across layers.
# ----------------------------------------------------------------------------
def encoder_stack_kernel(
    x_ref, kmask_ref,
    wqkv_ref, bqkv_ref, wo_ref, bo_ref,
    g1_ref, be1_ref,
    w1_ref, b1_ref, w2_ref, b2_ref,
    g2_ref, be2_ref,
    *out_refs, num_heads, save_attn,
):
    if save_attn:
        xo_ref, attn_ref = out_refs
    else:
        (xo_ref,) = out_refs
        attn_ref = None

    layer = pl.program_id(1)

    # Layer 0: seed the resident carry with the embedded input.
    @pl.when(layer == 0)
    def _():
        xo_ref[0] = x_ref[0]

    x = xo_ref[0]                                   # (S, D) f32, resident carry
    S, D = x.shape
    H = num_heads
    dh = D // H

    bf16 = jnp.bfloat16
    x_bf = x.astype(bf16)

    # --- fused QKV projection: one (S,D)x(D,3D) bf16 matmul, f32 accumulation.
    #     1/sqrt(dh) is already folded into wq / bq on the host.
    qkv = jnp.dot(x_bf, wqkv_ref[0], preferred_element_type=jnp.float32)
    qkv = qkv + bqkv_ref[0]                         # (S, 3D)
    q = qkv[:, 0 * D:1 * D]
    k = qkv[:, 1 * D:2 * D]
    v = qkv[:, 2 * D:3 * D]

    # --- head-major relayout (value-level, no scratch / masked stores) -------
    def to_heads(t):                                # (S, D) -> (H, S, dh)
        return jnp.concatenate(
            [t[None, :, h * dh:(h + 1) * dh] for h in range(H)], axis=0)

    qh = to_heads(q).astype(bf16)                   # (H, S, dh)
    kh = to_heads(k).astype(bf16)
    vh = to_heads(v).astype(bf16)

    # --- scores + key-padding bias + softmax (f32) ---------------------------
    scores = jnp.einsum("hqd,hkd->hqk", qh, kh,
                        preferred_element_type=jnp.float32)          # (H, S, S)
    bias = jnp.where(kmask_ref[0] != 0.0, 0.0, -1e9)                 # (1, S)
    scores = scores + bias[None, :, :]              # broadcast over heads, rows

    m = jnp.max(scores, axis=-1, keepdims=True)
    p = jnp.exp(scores - m)
    denom = jnp.sum(p, axis=-1, keepdims=True)
    p = p * pl.reciprocal(denom, approx=True)       # softmax probabilities

    if save_attn:
        attn_ref[0] = p                             # (H, S, S) for this (b, l)

    # --- context, merge heads, single output projection ----------------------
    ctx = jnp.einsum("hqk,hkd->hqd", p.astype(bf16), vh,
                     preferred_element_type=jnp.float32)             # (H, S, dh)
    ctx_m = jnp.concatenate([ctx[h] for h in range(H)], axis=-1)     # (S, D)
    attn_out = jnp.dot(ctx_m.astype(bf16), wo_ref[0],
                       preferred_element_type=jnp.float32) + bo_ref[0]

    # --- residual + LayerNorm 1 (f32) ----------------------------------------
    y = x + attn_out
    mu = jnp.mean(y, axis=-1, keepdims=True)
    var = jnp.mean(jnp.square(y - mu), axis=-1, keepdims=True)
    y = (y - mu) * lax.rsqrt(var + 1e-5) * g1_ref[0] + be1_ref[0]

    # --- FFN (bf16 matmuls, f32 accumulation) ---------------------------------
    h1 = jnp.dot(y.astype(bf16), w1_ref[0],
                 preferred_element_type=jnp.float32) + b1_ref[0]
    h1 = jnp.maximum(h1, 0.0)
    ffn = jnp.dot(h1.astype(bf16), w2_ref[0],
                  preferred_element_type=jnp.float32) + b2_ref[0]

    # --- residual + LayerNorm 2 (f32) ----------------------------------------
    z = y + ffn
    mu2 = jnp.mean(z, axis=-1, keepdims=True)
    var2 = jnp.mean(jnp.square(z - mu2), axis=-1, keepdims=True)
    z = (z - mu2) * lax.rsqrt(var2 + 1e-5) * g2_ref[0] + be2_ref[0]

    xo_ref[0] = z                                   # carry to the next layer


# ----------------------------------------------------------------------------
# Encoder forward: embedding + single fused pallas_call over all blocks.
# ----------------------------------------------------------------------------
def encoder_forward(src, src_mask, params, num_heads, save_attn_pattern=False):
    B, S = src.shape
    D = params["emb"].shape[1]
    L = len(params["blocks"])
    H = num_heads
    assert D % H == 0
    dh = D // H
    bf16 = jnp.bfloat16

    # TransformerEmbedding: token embedding + sinusoidal positional encoding
    # (dropout is identity at inference).
    x = params["emb"][src] + params["pos"][None, :S, :]              # (B, S, D)

    # Key-padding validity per batch: (B, 1, S); 1 = attend, 0 = masked.
    mask = src_mask
    if mask.ndim == 4:
        mask = mask[:, 0]                                            # (B, S, S)
    key_valid = jnp.max(mask, axis=-2, keepdims=True).astype(jnp.float32)

    blocks = params["blocks"]
    scale = 1.0 / (dh ** 0.5)

    # Stacked per-layer weights (streamed by BlockSpec pipelining).
    wqkv = jnp.stack([jnp.concatenate([blk["wq"] * scale, blk["wk"], blk["wv"]],
                                      axis=1) for blk in blocks]).astype(bf16)
    bqkv = jnp.stack([jnp.concatenate([blk["bq"] * scale, blk["bk"], blk["bv"]],
                                      axis=1) for blk in blocks])    # (L, 1, 3D)
    wo = jnp.stack([blk["wo"] for blk in blocks]).astype(bf16)       # (L, D, D)
    bo = jnp.stack([blk["bo"] for blk in blocks])                    # (L, 1, D)
    g1 = jnp.stack([blk["ln1_g"] for blk in blocks])
    be1 = jnp.stack([blk["ln1_b"] for blk in blocks])
    w1 = jnp.stack([blk["w1"] for blk in blocks]).astype(bf16)       # (L, D, F)
    b1 = jnp.stack([blk["b1"] for blk in blocks])                    # (L, 1, F)
    w2 = jnp.stack([blk["w2"] for blk in blocks]).astype(bf16)       # (L, F, D)
    b2 = jnp.stack([blk["b2"] for blk in blocks])
    g2 = jnp.stack([blk["ln2_g"] for blk in blocks])
    be2 = jnp.stack([blk["ln2_b"] for blk in blocks])

    x_spec = pl.BlockSpec((1, S, D), lambda b, l: (b, 0, 0))
    kmask_spec = pl.BlockSpec((1, 1, S), lambda b, l: (b, 0, 0))

    def layer_spec(arr):
        nd = arr.ndim
        return pl.BlockSpec((1,) + arr.shape[1:],
                            lambda b, l, _nd=nd: (l,) + (0,) * (_nd - 1))

    in_specs = [
        x_spec, kmask_spec,
        layer_spec(wqkv), layer_spec(bqkv),
        layer_spec(wo), layer_spec(bo),
        layer_spec(g1), layer_spec(be1),
        layer_spec(w1), layer_spec(b1),
        layer_spec(w2), layer_spec(b2),
        layer_spec(g2), layer_spec(be2),
    ]

    # x output block index is constant across the layer axis -> resident carry.
    out_x_spec = pl.BlockSpec((1, S, D), lambda b, l: (b, 0, 0))

    if save_attn_pattern:
        out_shape = (jax.ShapeDtypeStruct((B, S, D), jnp.float32),
                     jax.ShapeDtypeStruct((B * L, H, S, S), jnp.float32))
        out_specs = (out_x_spec,
                     pl.BlockSpec((1, H, S, S),
                                  lambda b, l: (b * L + l, 0, 0, 0)))
    else:
        out_shape = jax.ShapeDtypeStruct((B, S, D), jnp.float32)
        out_specs = out_x_spec

    kernel = functools.partial(encoder_stack_kernel,
                               num_heads=H, save_attn=save_attn_pattern)

    res = pl.pallas_call(
        kernel,
        out_shape=out_shape,
        grid=(B, L),
        in_specs=in_specs,
        out_specs=out_specs,
        compiler_params=pltpu.CompilerParams(
            # batch axis parallel (megacore / v7x 2-TC), layer axis is a carry.
            dimension_semantics=("parallel", "arbitrary")),
    )(x, key_valid,
      wqkv, bqkv, wo, bo, g1, be1, w1, b1, w2, b2, g2, be2)

    if save_attn_pattern:
        x_out, attn_all = res
        attn_patterns = attn_all.reshape(B, L, H, S, S)[0]           # (L, H, S, S)
        return x_out, attn_patterns
    return res, jnp.zeros((0,), jnp.float32)   # like torch.tensor([])


# ----------------------------------------------------------------------------
# Parameter initialization (deterministic, synthetic)
# ----------------------------------------------------------------------------
def sinusoidal_pos_encoding(max_len, d_model):
    pos = jnp.arange(max_len, dtype=jnp.float32)[:, None]
    i = jnp.arange(d_model, dtype=jnp.float32)[None, :]
    angle = pos / jnp.power(10000.0, (2.0 * jnp.floor(i / 2.0)) / d_model)
    pe = jnp.where(i % 2 == 0, jnp.sin(angle), jnp.cos(angle))
    return pe.astype(jnp.float32)  # (max_len, d_model)


def init_block_params(key, d_model, d_ffn):
    ks = jax.random.split(key, 6)
    s = 0.02
    return {
        "wq": s * jax.random.normal(ks[0], (d_model, d_model), jnp.float32),
        "bq": jnp.zeros((1, d_model), jnp.float32),
        "wk": s * jax.random.normal(ks[1], (d_model, d_model), jnp.float32),
        "bk": jnp.zeros((1, d_model), jnp.float32),
        "wv": s * jax.random.normal(ks[2], (d_model, d_model), jnp.float32),
        "bv": jnp.zeros((1, d_model), jnp.float32),
        "wo": s * jax.random.normal(ks[3], (d_model, d_model), jnp.float32),
        "bo": jnp.zeros((1, d_model), jnp.float32),
        "ln1_g": jnp.ones((1, d_model), jnp.float32),
        "ln1_b": jnp.zeros((1, d_model), jnp.float32),
        "w1": s * jax.random.normal(ks[4], (d_model, d_ffn), jnp.float32),
        "b1": jnp.zeros((1, d_ffn), jnp.float32),
        "w2": s * jax.random.normal(ks[5], (d_ffn, d_model), jnp.float32),
        "b2": jnp.zeros((1, d_model), jnp.float32),
        "ln2_g": jnp.ones((1, d_model), jnp.float32),
        "ln2_b": jnp.zeros((1, d_model), jnp.float32),
    }


def init_encoder_params(key, vocab_size, max_len, num_blocks, d_model, d_ffn):
    keys = jax.random.split(key, num_blocks + 1)
    return {
        "emb": 0.02 * jax.random.normal(keys[0], (vocab_size, d_model), jnp.float32),
        "pos": sinusoidal_pos_encoding(max_len, d_model),
        "blocks": [init_block_params(keys[i + 1], d_model, d_ffn)
                   for i in range(num_blocks)],
    }


# ----------------------------------------------------------------------------
if __name__ == "__main__":
    # Small, deterministic example shapes.
    vocab_size, max_len = 100, 16
    num_blocks, d_model, d_ffn, num_heads = 2, 32, 64, 4
    p_dropout = 0.1  # dropout is identity at inference; value unused
    B, S = 2, 8

    key = jax.random.PRNGKey(0)
    k_par, k_src = jax.random.split(key)
    params = init_encoder_params(k_par, vocab_size, max_len, num_blocks, d_model, d_ffn)

    src = jax.random.randint(k_src, (B, S), 0, vocab_size, dtype=jnp.int32)

    # Padding mask: batch 0 fully valid; batch 1 has its last 2 positions padded.
    valid = jnp.array([[1] * S, [1] * (S - 2) + [0, 0]], dtype=jnp.float32)   # (B, S)
    src_mask = valid[:, None, None, :] * jnp.ones((1, 1, S, 1), jnp.float32)  # (B,1,S,S)

    x_out, attn_patterns = encoder_forward(
        src, src_mask, params, num_heads, save_attn_pattern=True
    )
    jax.block_until_ready(x_out)
    jax.block_until_ready(attn_patterns)

    assert x_out.shape == (B, S, d_model)
    assert attn_patterns.shape == (num_blocks, num_heads, S, S)
    assert bool(jnp.all(jnp.isfinite(x_out)))
    assert bool(jnp.all(jnp.isfinite(attn_patterns)))
    print("KERNEL_OK")
</pallas_src>

<mosaic_0001>
module attributes {stable_mosaic.version = 11 : i64} {
  func.func @encoder_stack_kernel(%arg0: i32, %arg1: i32, %arg2: memref<1x8x32xf32, #tpu.memory_space<vmem>>, %arg3: memref<1x1x8xf32, #tpu.memory_space<vmem>>, %arg4: memref<1x32x96xbf16, #tpu.memory_space<vmem>>, %arg5: memref<1x1x96xf32, #tpu.memory_space<vmem>>, %arg6: memref<1x32x32xbf16, #tpu.memory_space<vmem>>, %arg7: memref<1x1x32xf32, #tpu.memory_space<vmem>>, %arg8: memref<1x1x32xf32, #tpu.memory_space<vmem>>, %arg9: memref<1x1x32xf32, #tpu.memory_space<vmem>>, %arg10: memref<1x32x64xbf16, #tpu.memory_space<vmem>>, %arg11: memref<1x1x64xf32, #tpu.memory_space<vmem>>, %arg12: memref<1x64x32xbf16, #tpu.memory_space<vmem>>, %arg13: memref<1x1x32xf32, #tpu.memory_space<vmem>>, %arg14: memref<1x1x32xf32, #tpu.memory_space<vmem>>, %arg15: memref<1x1x32xf32, #tpu.memory_space<vmem>>, %arg16: memref<1x8x32xf32, #tpu.memory_space<vmem>>, %arg17: memref<1x4x8x8xf32, #tpu.memory_space<vmem>>) attributes {dimension_semantics = [#tpu.dimension_semantics<parallel>, #tpu.dimension_semantics<arbitrary>], iteration_bounds = array<i64: 2, 2>, scalar_prefetch = 0 : i64, scratch_operands = 0 : i64, tpu.core_type = #tpu.core_type<tc>, window_params = [{transform_indices = @transform_0, window_bounds = array<i64: 1, 8, 32>}, {transform_indices = @transform_1, window_bounds = array<i64: 1, 1, 8>}, {transform_indices = @transform_2, window_bounds = array<i64: 1, 32, 96>}, {transform_indices = @transform_3, window_bounds = array<i64: 1, 1, 96>}, {transform_indices = @transform_4, window_bounds = array<i64: 1, 32, 32>}, {transform_indices = @transform_5, window_bounds = array<i64: 1, 1, 32>}, {transform_indices = @transform_6, window_bounds = array<i64: 1, 1, 32>}, {transform_indices = @transform_7, window_bounds = array<i64: 1, 1, 32>}, {transform_indices = @transform_8, window_bounds = array<i64: 1, 32, 64>}, {transform_indices = @transform_9, window_bounds = array<i64: 1, 1, 64>}, {transform_indices = @transform_10, window_bounds = array<i64: 1, 64, 32>}, {transform_indices = @transform_11, window_bounds = array<i64: 1, 1, 32>}, {transform_indices = @transform_12, window_bounds = array<i64: 1, 1, 32>}, {transform_indices = @transform_13, window_bounds = array<i64: 1, 1, 32>}, {transform_indices = @transform_14, window_bounds = array<i64: 1, 8, 32>}, {transform_indices = @transform_15, window_bounds = array<i64: 1, 4, 8, 8>}]} {
    %c0_i32 = arith.constant 0 : i32
    %0 = arith.cmpi eq, %arg1, %c0_i32 : i32
    %1 = arith.extui %0 : i1 to i32
    %c0_i32_0 = arith.constant 0 : i32
    %2 = arith.cmpi ne, %1, %c0_i32_0 : i32
    scf.if %2 {
      %c0_70 = arith.constant 0 : index
      %c0_71 = arith.constant 0 : index
      %c0_72 = arith.constant 0 : index
      %164 = vector.load %arg2[%c0_70, %c0_71, %c0_72] : memref<1x8x32xf32, #tpu.memory_space<vmem>>, vector<1x8x32xf32>
      %165 = vector.shape_cast %164 : vector<1x8x32xf32> to vector<8x32xf32>
      %c0_73 = arith.constant 0 : index
      %c0_74 = arith.constant 0 : index
      %c0_75 = arith.constant 0 : index
      %166 = vector.load %arg16[%c0_73, %c0_74, %c0_75] : memref<1x8x32xf32, #tpu.memory_space<vmem>>, vector<1x8x32xf32>
      %167 = vector.shape_cast %166 : vector<1x8x32xf32> to vector<8x32xf32>
      %168 = vector.shape_cast %165 : vector<8x32xf32> to vector<1x8x32xf32>
      tpu.vector_store %arg16[%c0_73, %c0_74, %c0_75], %168 {strides = array<i32>} : memref<1x8x32xf32, #tpu.memory_space<vmem>>, vector<1x8x32xf32>,
    } else {
    }
    %c0 = arith.constant 0 : index
    %c0_1 = arith.constant 0 : index
    %c0_2 = arith.constant 0 : index
    %3 = vector.load %arg16[%c0, %c0_1, %c0_2] : memref<1x8x32xf32, #tpu.memory_space<vmem>>, vector<1x8x32xf32>
    %4 = vector.shape_cast %3 : vector<1x8x32xf32> to vector<8x32xf32>
    %5 = arith.truncf %4 : vector<8x32xf32> to vector<8x32xbf16>
    %c0_3 = arith.constant 0 : index
    %c0_4 = arith.constant 0 : index
    %c0_5 = arith.constant 0 : index
    %6 = vector.load %arg4[%c0_3, %c0_4, %c0_5] : memref<1x32x96xbf16, #tpu.memory_space<vmem>>, vector<1x32x96xbf16>
    %7 = vector.shape_cast %6 : vector<1x32x96xbf16> to vector<32x96xbf16>
    %cst = arith.constant dense<0.000000e+00> : vector<8x96xf32>
    %8 = tpu.matmul %5, %7, %cst {dimension_numbers = #tpu.dot_dimension_numbers<[1], [0], [0], [1], [0, 0, 1, 1], [], []>} : vector<8x32xbf16>, vector<32x96xbf16>, vector<8x96xf32> -> vector<8x96xf32>
    %c0_6 = arith.constant 0 : index
    %c0_7 = arith.constant 0 : index
    %c0_8 = arith.constant 0 : index
    %9 = vector.load %arg5[%c0_6, %c0_7, %c0_8] : memref<1x1x96xf32, #tpu.memory_space<vmem>>, vector<1x1x96xf32>
    %10 = vector.shape_cast %9 : vector<1x1x96xf32> to vector<1x96xf32>
    %11 = vector.broadcast %10 : vector<1x96xf32> to vector<8x96xf32>
    %12 = arith.addf %8, %11 : vector<8x96xf32>
    %13 = vector.extract_strided_slice %12 {offsets = [0, 0], sizes = [8, 32], strides = [1, 1]} : vector<8x96xf32> to vector<8x32xf32>
    %14 = vector.extract_strided_slice %12 {offsets = [0, 32], sizes = [8, 32], strides = [1, 1]} : vector<8x96xf32> to vector<8x32xf32>
    %15 = vector.extract_strided_slice %12 {offsets = [0, 64], sizes = [8, 32], strides = [1, 1]} : vector<8x96xf32> to vector<8x32xf32>
    %16 = vector.extract_strided_slice %13 {offsets = [0, 0], sizes = [8, 8], strides = [1, 1]} : vector<8x32xf32> to vector<8x8xf32>
    %17 = vector.shape_cast %16 : vector<8x8xf32> to vector<1x8x8xf32>
    %18 = vector.extract_strided_slice %13 {offsets = [0, 8], sizes = [8, 8], strides = [1, 1]} : vector<8x32xf32> to vector<8x8xf32>
    %19 = vector.shape_cast %18 : vector<8x8xf32> to vector<1x8x8xf32>
    %20 = vector.extract_strided_slice %13 {offsets = [0, 16], sizes = [8, 8], strides = [1, 1]} : vector<8x32xf32> to vector<8x8xf32>
    %21 = vector.shape_cast %20 : vector<8x8xf32> to vector<1x8x8xf32>
    %22 = vector.extract_strided_slice %13 {offsets = [0, 24], sizes = [8, 8], strides = [1, 1]} : vector<8x32xf32> to vector<8x8xf32>
    %23 = vector.shape_cast %22 : vector<8x8xf32> to vector<1x8x8xf32>
    %24 = tpu.concatenate %17, %19, %21, %23 in 0 : vector<1x8x8xf32>, vector<1x8x8xf32>, vector<1x8x8xf32>, vector<1x8x8xf32> -> vector<4x8x8xf32>
    %25 = arith.truncf %24 : vector<4x8x8xf32> to vector<4x8x8xbf16>
    %26 = vector.extract_strided_slice %14 {offsets = [0, 0], sizes = [8, 8], strides = [1, 1]} : vector<8x32xf32> to vector<8x8xf32>
    %27 = vector.shape_cast %26 : vector<8x8xf32> to vector<1x8x8xf32>
    %28 = vector.extract_strided_slice %14 {offsets = [0, 8], sizes = [8, 8], strides = [1, 1]} : vector<8x32xf32> to vector<8x8xf32>
    %29 = vector.shape_cast %28 : vector<8x8xf32> to vector<1x8x8xf32>
    %30 = vector.extract_strided_slice %14 {offsets = [0, 16], sizes = [8, 8], strides = [1, 1]} : vector<8x32xf32> to vector<8x8xf32>
    %31 = vector.shape_cast %30 : vector<8x8xf32> to vector<1x8x8xf32>
    %32 = vector.extract_strided_slice %14 {offsets = [0, 24], sizes = [8, 8], strides = [1, 1]} : vector<8x32xf32> to vector<8x8xf32>
    %33 = vector.shape_cast %32 : vector<8x8xf32> to vector<1x8x8xf32>
    %34 = tpu.concatenate %27, %29, %31, %33 in 0 : vector<1x8x8xf32>, vector<1x8x8xf32>, vector<1x8x8xf32>, vector<1x8x8xf32> -> vector<4x8x8xf32>
    %35 = arith.truncf %34 : vector<4x8x8xf32> to vector<4x8x8xbf16>
    %36 = vector.extract_strided_slice %15 {offsets = [0, 0], sizes = [8, 8], strides = [1, 1]} : vector<8x32xf32> to vector<8x8xf32>
    %37 = vector.shape_cast %36 : vector<8x8xf32> to vector<1x8x8xf32>
    %38 = vector.extract_strided_slice %15 {offsets = [0, 8], sizes = [8, 8], strides = [1, 1]} : vector<8x32xf32> to vector<8x8xf32>
    %39 = vector.shape_cast %38 : vector<8x8xf32> to vector<1x8x8xf32>
    %40 = vector.extract_strided_slice %15 {offsets = [0, 16], sizes = [8, 8], strides = [1, 1]} : vector<8x32xf32> to vector<8x8xf32>
    %41 = vector.shape_cast %40 : vector<8x8xf32> to vector<1x8x8xf32>
    %42 = vector.extract_strided_slice %15 {offsets = [0, 24], sizes = [8, 8], strides = [1, 1]} : vector<8x32xf32> to vector<8x8xf32>
    %43 = vector.shape_cast %42 : vector<8x8xf32> to vector<1x8x8xf32>
    %44 = tpu.concatenate %37, %39, %41, %43 in 0 : vector<1x8x8xf32>, vector<1x8x8xf32>, vector<1x8x8xf32>, vector<1x8x8xf32> -> vector<4x8x8xf32>
    %45 = arith.truncf %44 : vector<4x8x8xf32> to vector<4x8x8xbf16>
    "tpu.trace_start"() <{level = 10 : i32, message = "hqd,hkd->hqk"}> : () -> ()
    %cst_9 = arith.constant dense<0.000000e+00> : vector<4x8x8xf32>
    %46 = tpu.matmul %25, %35, %cst_9 {dimension_numbers = #tpu.dot_dimension_numbers<[2], [2], [1], [1], [0, 0, 0, 1, 1, 1], [0], [0]>} : vector<4x8x8xbf16>, vector<4x8x8xbf16>, vector<4x8x8xf32> -> vector<4x8x8xf32>
    "tpu.trace_stop"() : () -> ()
    %c0_10 = arith.constant 0 : index
    %c0_11 = arith.constant 0 : index
    %c0_12 = arith.constant 0 : index
    %47 = vector.load %arg3[%c0_10, %c0_11, %c0_12] : memref<1x1x8xf32, #tpu.memory_space<vmem>>, vector<1x1x8xf32>
    %48 = vector.shape_cast %47 : vector<1x1x8xf32> to vector<1x8xf32>
    %cst_13 = arith.constant 0.000000e+00 : f32
    %49 = vector.broadcast %cst_13 : f32 to vector<1x8xf32>
    %50 = arith.cmpf one, %48, %49 : vector<1x8xf32>
    %cst_14 = arith.constant 0.000000e+00 : f32
    %cst_15 = arith.constant -1.000000e+09 : f32
    %51 = vector.broadcast %cst_14 : f32 to vector<1x8xf32>
    %52 = vector.broadcast %cst_15 : f32 to vector<1x8xf32>
    %53 = arith.select %50, %51, %52 : vector<1x8xi1>, vector<1x8xf32>
    %54 = vector.shape_cast %53 : vector<1x8xf32> to vector<1x1x8xf32>
    %55 = vector.broadcast %54 : vector<1x1x8xf32> to vector<4x8x8xf32>
    %56 = arith.addf %46, %55 : vector<4x8x8xf32>
    %cst_16 = arith.constant dense<0xFF800000> : vector<4x8xf32>
    %57 = vector.multi_reduction <maximumf>, %56, %cst_16 [2] : vector<4x8x8xf32> to vector<4x8xf32>
    %58 = vector.shape_cast %57 : vector<4x8xf32> to vector<4x8x1xf32>
    %59 = vector.broadcast %58 : vector<4x8x1xf32> to vector<4x8x8xf32>
    %60 = arith.subf %56, %59 : vector<4x8x8xf32>
    %61 = math.exp %60 : vector<4x8x8xf32>
    %cst_17 = arith.constant dense<0.000000e+00> : vector<4x8xf32>
    %62 = vector.multi_reduction <add>, %61, %cst_17 [2] : vector<4x8x8xf32> to vector<4x8xf32>
    %63 = vector.shape_cast %62 : vector<4x8xf32> to vector<4x8x1xf32>
    %64 = tpu.reciprocal %63 {approx = true} : vector<4x8x1xf32> -> vector<4x8x1xf32>
    %65 = vector.broadcast %64 : vector<4x8x1xf32> to vector<4x8x8xf32>
    %66 = arith.mulf %61, %65 : vector<4x8x8xf32>
    %c0_18 = arith.constant 0 : index
    %c0_19 = arith.constant 0 : index
    %c0_20 = arith.constant 0 : index
    %c0_21 = arith.constant 0 : index
    %67 = vector.load %arg17[%c0_18, %c0_19, %c0_20, %c0_21] : memref<1x4x8x8xf32, #tpu.memory_space<vmem>>, vector<1x4x8x8xf32>
    %68 = vector.shape_cast %67 : vector<1x4x8x8xf32> to vector<4x8x8xf32>
    %69 = vector.shape_cast %66 : vector<4x8x8xf32> to vector<1x4x8x8xf32>
    tpu.vector_store %arg17[%c0_18, %c0_19, %c0_20, %c0_21], %69 {strides = array<i32>} : memref<1x4x8x8xf32, #tpu.memory_space<vmem>>, vector<1x4x8x8xf32>,
    %70 = arith.truncf %66 : vector<4x8x8xf32> to vector<4x8x8xbf16>
    "tpu.trace_start"() <{level = 10 : i32, message = "hqk,hkd->hqd"}> : () -> ()
    %cst_22 = arith.constant dense<0.000000e+00> : vector<4x8x8xf32>
    %71 = tpu.matmul %70, %45, %cst_22 {dimension_numbers = #tpu.dot_dimension_numbers<[2], [1], [1], [2], [0, 0, 0, 1, 1, 2], [0], [0]>} : vector<4x8x8xbf16>, vector<4x8x8xbf16>, vector<4x8x8xf32> -> vector<4x8x8xf32>
    "tpu.trace_stop"() : () -> ()
    %72 = vector.extract_strided_slice %71 {offsets = [0, 0, 0], sizes = [1, 8, 8], strides = [1, 1, 1]} : vector<4x8x8xf32> to vector<1x8x8xf32>
    %73 = vector.shape_cast %72 : vector<1x8x8xf32> to vector<8x8xf32>
    %74 = vector.extract_strided_slice %71 {offsets = [1, 0, 0], sizes = [1, 8, 8], strides = [1, 1, 1]} : vector<4x8x8xf32> to vector<1x8x8xf32>
    %75 = vector.shape_cast %74 : vector<1x8x8xf32> to vector<8x8xf32>
    %76 = vector.extract_strided_slice %71 {offsets = [2, 0, 0], sizes = [1, 8, 8], strides = [1, 1, 1]} : vector<4x8x8xf32> to vector<1x8x8xf32>
    %77 = vector.shape_cast %76 : vector<1x8x8xf32> to vector<8x8xf32>
    %78 = vector.extract_strided_slice %71 {offsets = [3, 0, 0], sizes = [1, 8, 8], strides = [1, 1, 1]} : vector<4x8x8xf32> to vector<1x8x8xf32>
    %79 = vector.shape_cast %78 : vector<1x8x8xf32> to vector<8x8xf32>
    %80 = tpu.concatenate %73, %75, %77, %79 in 1 : vector<8x8xf32>, vector<8x8xf32>, vector<8x8xf32>, vector<8x8xf32> -> vector<8x32xf32>
    %81 = arith.truncf %80 : vector<8x32xf32> to vector<8x32xbf16>
    %c0_23 = arith.constant 0 : index
    %c0_24 = arith.constant 0 : index
    %c0_25 = arith.constant 0 : index
    %82 = vector.load %arg6[%c0_23, %c0_24, %c0_25] : memref<1x32x32xbf16, #tpu.memory_space<vmem>>, vector<1x32x32xbf16>
    %83 = vector.shape_cast %82 : vector<1x32x32xbf16> to vector<32x32xbf16>
    %cst_26 = arith.constant dense<0.000000e+00> : vector<8x32xf32>
    %84 = tpu.matmul %81, %83, %cst_26 {dimension_numbers = #tpu.dot_dimension_numbers<[1], [0], [0], [1], [0, 0, 1, 1], [], []>} : vector<8x32xbf16>, vector<32x32xbf16>, vector<8x32xf32> -> vector<8x32xf32>
    %c0_27 = arith.constant 0 : index
    %c0_28 = arith.constant 0 : index
    %c0_29 = arith.constant 0 : index
    %85 = vector.load %arg7[%c0_27, %c0_28, %c0_29] : memref<1x1x32xf32, #tpu.memory_space<vmem>>, vector<1x1x32xf32>
    %86 = vector.shape_cast %85 : vector<1x1x32xf32> to vector<1x32xf32>
    %87 = vector.broadcast %86 : vector<1x32xf32> to vector<8x32xf32>
    %88 = arith.addf %84, %87 : vector<8x32xf32>
    %89 = arith.addf %4, %88 : vector<8x32xf32>
    %cst_30 = arith.constant dense<0.000000e+00> : vector<8xf32>
    %90 = vector.multi_reduction <add>, %89, %cst_30 [1] : vector<8x32xf32> to vector<8xf32>
    %91 = vector.shape_cast %90 : vector<8xf32> to vector<8x1xf32>
    %cst_31 = arith.constant 3.200000e+01 : f32
    %92 = vector.broadcast %cst_31 : f32 to vector<8x1xf32>
    %93 = arith.divf %91, %92 : vector<8x1xf32>
    %94 = vector.broadcast %93 : vector<8x1xf32> to vector<8x32xf32>
    %95 = arith.subf %89, %94 : vector<8x32xf32>
    %96 = arith.mulf %95, %95 : vector<8x32xf32>
    %cst_32 = arith.constant dense<0.000000e+00> : vector<8xf32>
    %97 = vector.multi_reduction <add>, %96, %cst_32 [1] : vector<8x32xf32> to vector<8xf32>
    %98 = vector.shape_cast %97 : vector<8xf32> to vector<8x1xf32>
    %cst_33 = arith.constant 3.200000e+01 : f32
    %99 = vector.broadcast %cst_33 : f32 to vector<8x1xf32>
    %100 = arith.divf %98, %99 : vector<8x1xf32>
    %101 = vector.broadcast %93 : vector<8x1xf32> to vector<8x32xf32>
    %102 = arith.subf %89, %101 : vector<8x32xf32>
    %cst_34 = arith.constant 9.99999974E-6 : f32
    %103 = vector.broadcast %cst_34 : f32 to vector<8x1xf32>
    %104 = arith.addf %100, %103 : vector<8x1xf32>
    %105 = math.rsqrt %104 : vector<8x1xf32>
    %106 = vector.broadcast %105 : vector<8x1xf32> to vector<8x32xf32>
    %107 = arith.mulf %102, %106 : vector<8x32xf32>
    %c0_35 = arith.constant 0 : index
    %c0_36 = arith.constant 0 : index
    %c0_37 = arith.constant 0 : index
    %108 = vector.load %arg8[%c0_35, %c0_36, %c0_37] : memref<1x1x32xf32, #tpu.memory_space<vmem>>, vector<1x1x32xf32>
    %109 = vector.shape_cast %108 : vector<1x1x32xf32> to vector<1x32xf32>
    %110 = vector.broadcast %109 : vector<1x32xf32> to vector<8x32xf32>
    %111 = arith.mulf %107, %110 : vector<8x32xf32>
    %c0_38 = arith.constant 0 : index
    %c0_39 = arith.constant 0 : index
    %c0_40 = arith.constant 0 : index
    %112 = vector.load %arg9[%c0_38, %c0_39, %c0_40] : memref<1x1x32xf32, #tpu.memory_space<vmem>>, vector<1x1x32xf32>
    %113 = vector.shape_cast %112 : vector<1x1x32xf32> to vector<1x32xf32>
    %114 = vector.broadcast %113 : vector<1x32xf32> to vector<8x32xf32>
    %115 = arith.addf %111, %114 : vector<8x32xf32>
    %116 = arith.truncf %115 : vector<8x32xf32> to vector<8x32xbf16>
    %c0_41 = arith.constant 0 : index
    %c0_42 = arith.constant 0 : index
    %c0_43 = arith.constant 0 : index
    %117 = vector.load %arg10[%c0_41, %c0_42, %c0_43] : memref<1x32x64xbf16, #tpu.memory_space<vmem>>, vector<1x32x64xbf16>
    %118 = vector.shape_cast %117 : vector<1x32x64xbf16> to vector<32x64xbf16>
    %cst_44 = arith.constant dense<0.000000e+00> : vector<8x64xf32>
    %119 = tpu.matmul %116, %118, %cst_44 {dimension_numbers = #tpu.dot_dimension_numbers<[1], [0], [0], [1], [0, 0, 1, 1], [], []>} : vector<8x32xbf16>, vector<32x64xbf16>, vector<8x64xf32> -> vector<8x64xf32>
    %c0_45 = arith.constant 0 : index
    %c0_46 = arith.constant 0 : index
    %c0_47 = arith.constant 0 : index
    %120 = vector.load %arg11[%c0_45, %c0_46, %c0_47] : memref<1x1x64xf32, #tpu.memory_space<vmem>>, vector<1x1x64xf32>
    %121 = vector.shape_cast %120 : vector<1x1x64xf32> to vector<1x64xf32>
    %122 = vector.broadcast %121 : vector<1x64xf32> to vector<8x64xf32>
    %123 = arith.addf %119, %122 : vector<8x64xf32>
    %cst_48 = arith.constant 0.000000e+00 : f32
    %124 = vector.broadcast %cst_48 : f32 to vector<8x64xf32>
    %125 = arith.maximumf %123, %124 : vector<8x64xf32>
    %126 = arith.truncf %125 : vector<8x64xf32> to vector<8x64xbf16>
    %c0_49 = arith.constant 0 : index
    %c0_50 = arith.constant 0 : index
    %c0_51 = arith.constant 0 : index
    %127 = vector.load %arg12[%c0_49, %c0_50, %c0_51] : memref<1x64x32xbf16, #tpu.memory_space<vmem>>, vector<1x64x32xbf16>
    %128 = vector.shape_cast %127 : vector<1x64x32xbf16> to vector<64x32xbf16>
    %cst_52 = arith.constant dense<0.000000e+00> : vector<8x32xf32>
    %129 = tpu.matmul %126, %128, %cst_52 {dimension_numbers = #tpu.dot_dimension_numbers<[1], [0], [0], [1], [0, 0, 1, 1], [], []>} : vector<8x64xbf16>, vector<64x32xbf16>, vector<8x32xf32> -> vector<8x32xf32>
    %c0_53 = arith.constant 0 : index
    %c0_54 = arith.constant 0 : index
    %c0_55 = arith.constant 0 : index
    %130 = vector.load %arg13[%c0_53, %c0_54, %c0_55] : memref<1x1x32xf32, #tpu.memory_space<vmem>>, vector<1x1x32xf32>
    %131 = vector.shape_cast %130 : vector<1x1x32xf32> to vector<1x32xf32>
    %132 = vector.broadcast %131 : vector<1x32xf32> to vector<8x32xf32>
    %133 = arith.addf %129, %132 : vector<8x32xf32>
    %134 = arith.addf %115, %133 : vector<8x32xf32>
    %cst_56 = arith.constant dense<0.000000e+00> : vector<8xf32>
    %135 = vector.multi_reduction <add>, %134, %cst_56 [1] : vector<8x32xf32> to vector<8xf32>
    %136 = vector.shape_cast %135 : vector<8xf32> to vector<8x1xf32>
    %cst_57 = arith.constant 3.200000e+01 : f32
    %137 = vector.broadcast %cst_57 : f32 to vector<8x1xf32>
    %138 = arith.divf %136, %137 : vector<8x1xf32>
    %139 = vector.broadcast %138 : vector<8x1xf32> to vector<8x32xf32>
    %140 = arith.subf %134, %139 : vector<8x32xf32>
    %141 = arith.mulf %140, %140 : vector<8x32xf32>
    %cst_58 = arith.constant dense<0.000000e+00> : vector<8xf32>
    %142 = vector.multi_reduction <add>, %141, %cst_58 [1] : vector<8x32xf32> to vector<8xf32>
    %143 = vector.shape_cast %142 : vector<8xf32> to vector<8x1xf32>
    %cst_59 = arith.constant 3.200000e+01 : f32
    %144 = vector.broadcast %cst_59 : f32 to vector<8x1xf32>
    %145 = arith.divf %143, %144 : vector<8x1xf32>
    %146 = vector.broadcast %138 : vector<8x1xf32> to vector<8x32xf32>
    %147 = arith.subf %134, %146 : vector<8x32xf32>
    %cst_60 = arith.constant 9.99999974E-6 : f32
    %148 = vector.broadcast %cst_60 : f32 to vector<8x1xf32>
    %149 = arith.addf %145, %148 : vector<8x1xf32>
    %150 = math.rsqrt %149 : vector<8x1xf32>
    %151 = vector.broadcast %150 : vector<8x1xf32> to vector<8x32xf32>
    %152 = arith.mulf %147, %151 : vector<8x32xf32>
    %c0_61 = arith.constant 0 : index
    %c0_62 = arith.constant 0 : index
    %c0_63 = arith.constant 0 : index
    %153 = vector.load %arg14[%c0_61, %c0_62, %c0_63] : memref<1x1x32xf32, #tpu.memory_space<vmem>>, vector<1x1x32xf32>
    %154 = vector.shape_cast %153 : vector<1x1x32xf32> to vector<1x32xf32>
    %155 = vector.broadcast %154 : vector<1x32xf32> to vector<8x32xf32>
    %156 = arith.mulf %152, %155 : vector<8x32xf32>
    %c0_64 = arith.constant 0 : index
    %c0_65 = arith.constant 0 : index
    %c0_66 = arith.constant 0 : index
    %157 = vector.load %arg15[%c0_64, %c0_65, %c0_66] : memref<1x1x32xf32, #tpu.memory_space<vmem>>, vector<1x1x32xf32>
    %158 = vector.shape_cast %157 : vector<1x1x32xf32> to vector<1x32xf32>
    %159 = vector.broadcast %158 : vector<1x32xf32> to vector<8x32xf32>
    %160 = arith.addf %156, %159 : vector<8x32xf32>
    %c0_67 = arith.constant 0 : index
    %c0_68 = arith.constant 0 : index
    %c0_69 = arith.constant 0 : index
    %161 = vector.load %arg16[%c0_67, %c0_68, %c0_69] : memref<1x8x32xf32, #tpu.memory_space<vmem>>, vector<1x8x32xf32>
    %162 = vector.shape_cast %161 : vector<1x8x32xf32> to vector<8x32xf32>
    %163 = vector.shape_cast %160 : vector<8x32xf32> to vector<1x8x32xf32>
    tpu.vector_store %arg16[%c0_67, %c0_68, %c0_69], %163 {strides = array<i32>} : memref<1x8x32xf32, #tpu.memory_space<vmem>>, vector<1x8x32xf32>,
    return
  }
  func.func @transform_0(%arg0: i32, %arg1: i32) -> (i32, i32, i32) {
    %c0_i32 = arith.constant 0 : i32
    %c0_i32_0 = arith.constant 0 : i32
    %c0_i32_1 = arith.constant 0 : i32
    return %arg0, %c0_i32, %c0_i32_0 : i32, i32, i32
  }
  func.func @transform_1(%arg0: i32, %arg1: i32) -> (i32, i32, i32) {
    %c0_i32 = arith.constant 0 : i32
    %c0_i32_0 = arith.constant 0 : i32
    %c0_i32_1 = arith.constant 0 : i32
    return %arg0, %c0_i32, %c0_i32_0 : i32, i32, i32
  }
  func.func @transform_2(%arg0: i32, %arg1: i32) -> (i32, i32, i32) {
    %c0_i32 = arith.constant 0 : i32
    %c0_i32_0 = arith.constant 0 : i32
    %c0_i32_1 = arith.constant 0 : i32
    return %arg1, %c0_i32, %c0_i32_0 : i32, i32, i32
  }
  func.func @transform_3(%arg0: i32, %arg1: i32) -> (i32, i32, i32) {
    %c0_i32 = arith.constant 0 : i32
    %c0_i32_0 = arith.constant 0 : i32
    %c0_i32_1 = arith.constant 0 : i32
    return %arg1, %c0_i32, %c0_i32_0 : i32, i32, i32
  }
  func.func @transform_4(%arg0: i32, %arg1: i32) -> (i32, i32, i32) {
    %c0_i32 = arith.constant 0 : i32
    %c0_i32_0 = arith.constant 0 : i32
    %c0_i32_1 = arith.constant 0 : i32
    return %arg1, %c0_i32, %c0_i32_0 : i32, i32, i32
  }
  func.func @transform_5(%arg0: i32, %arg1: i32) -> (i32, i32, i32) {
    %c0_i32 = arith.constant 0 : i32
    %c0_i32_0 = arith.constant 0 : i32
    %c0_i32_1 = arith.constant 0 : i32
    return %arg1, %c0_i32, %c0_i32_0 : i32, i32, i32
  }
  func.func @transform_6(%arg0: i32, %arg1: i32) -> (i32, i32, i32) {
    %c0_i32 = arith.constant 0 : i32
    %c0_i32_0 = arith.constant 0 : i32
    %c0_i32_1 = arith.constant 0 : i32
    return %arg1, %c0_i32, %c0_i32_0 : i32, i32, i32
  }
  func.func @transform_7(%arg0: i32, %arg1: i32) -> (i32, i32, i32) {
    %c0_i32 = arith.constant 0 : i32
    %c0_i32_0 = arith.constant 0 : i32
    %c0_i32_1 = arith.constant 0 : i32
    return %arg1, %c0_i32, %c0_i32_0 : i32, i32, i32
  }
  func.func @transform_8(%arg0: i32, %arg1: i32) -> (i32, i32, i32) {
    %c0_i32 = arith.constant 0 : i32
    %c0_i32_0 = arith.constant 0 : i32
    %c0_i32_1 = arith.constant 0 : i32
    return %arg1, %c0_i32, %c0_i32_0 : i32, i32, i32
  }
  func.func @transform_9(%arg0: i32, %arg1: i32) -> (i32, i32, i32) {
    %c0_i32 = arith.constant 0 : i32
    %c0_i32_0 = arith.constant 0 : i32
    %c0_i32_1 = arith.constant 0 : i32
    return %arg1, %c0_i32, %c0_i32_0 : i32, i32, i32
  }
  func.func @transform_10(%arg0: i32, %arg1: i32) -> (i32, i32, i32) {
    %c0_i32 = arith.constant 0 : i32
    %c0_i32_0 = arith.constant 0 : i32
    %c0_i32_1 = arith.constant 0 : i32
    return %arg1, %c0_i32, %c0_i32_0 : i32, i32, i32
  }
  func.func @transform_11(%arg0: i32, %arg1: i32) -> (i32, i32, i32) {
    %c0_i32 = arith.constant 0 : i32
    %c0_i32_0 = arith.constant 0 : i32
    %c0_i32_1 = arith.constant 0 : i32
    return %arg1, %c0_i32, %c0_i32_0 : i32, i32, i32
  }
  func.func @transform_12(%arg0: i32, %arg1: i32) -> (i32, i32, i32) {
    %c0_i32 = arith.constant 0 : i32
    %c0_i32_0 = arith.constant 0 : i32
    %c0_i32_1 = arith.constant 0 : i32
    return %arg1, %c0_i32, %c0_i32_0 : i32, i32, i32
  }
  func.func @transform_13(%arg0: i32, %arg1: i32) -> (i32, i32, i32) {
    %c0_i32 = arith.constant 0 : i32
    %c0_i32_0 = arith.constant 0 : i32
    %c0_i32_1 = arith.constant 0 : i32
    return %arg1, %c0_i32, %c0_i32_0 : i32, i32, i32
  }
  func.func @transform_14(%arg0: i32, %arg1: i32) -> (i32, i32, i32) {
    %c0_i32 = arith.constant 0 : i32
    %c0_i32_0 = arith.constant 0 : i32
    %c0_i32_1 = arith.constant 0 : i32
    return %arg0, %c0_i32, %c0_i32_0 : i32, i32, i32
  }
  func.func @transform_15(%arg0: i32, %arg1: i32) -> (i32, i32, i32, i32) {
    %c2_i32 = arith.constant 2 : i32
    %0 = arith.muli %arg0, %c2_i32 : i32
    %1 = arith.addi %0, %arg1 : i32
    %c0_i32 = arith.constant 0 : i32
    %c0_i32_0 = arith.constant 0 : i32
    %c0_i32_1 = arith.constant 0 : i32
    %c0_i32_2 = arith.constant 0 : i32
    return %1, %c0_i32, %c0_i32_0, %c0_i32_1 : i32, i32, i32, i32
  }
}

</mosaic_0001>

<bundles_post_ra>
// kernel: tpu_custom_call.1
= control target key start
LH: loop header
LB: loop body
LE: loop exit
PB: predicated region body
PF: predicated region fallthrough
CT: control target
= control target key end

     0   :  { %s3050_s0 = inlined_call_operand.hbm [shape: f32[2,8,32], index: 0, kind: input, shape index: {}]   ;;  %s3051_s1 = inlined_call_operand.hbm [shape: f32[2,1,8], index: 1, kind: input, shape index: {}]   ;;  %s3052_s2 = inlined_call_operand.vmem [shape: bf16[2,32,96], index: 2, kind: input, shape index: {}]   ;;  %s3053_s3 = inlined_call_operand.vmem [shape: f32[2,1,96], index: 3, kind: input, shape index: {}]   ;;  %s3054_s4 = inlined_call_operand.vmem [shape: bf16[2,32,32], index: 4, kind: input, shape index: {}]   ;;  %s3055_s5 = inlined_call_operand.vmem [shape: f32[2,1,32], index: 5, kind: input, shape index: {}]   ;;  %s3056_s6 = inlined_call_operand.vmem [shape: f32[2,1,32], index: 6, kind: input, shape index: {}]   ;;  %s3057_s7 = inlined_call_operand.vmem [shape: f32[2,1,32], index: 7, kind: input, shape index: {}]   ;;  %s3058_s8 = inlined_call_operand.vmem [shape: bf16[2,32,64], index: 8, kind: input, shape index: {}]   ;;  %s3059_s9 = inlined_call_operand.vmem [shape: f32[2,1,64], index: 9, kind: input, shape index: {}]   ;;  %s3060_s10 = inlined_call_operand.vmem [shape: bf16[2,64,32], index: 10, kind: input, shape index: {}]   ;;  %s3061_s11 = inlined_call_operand.vmem [shape: f32[2,1,32], index: 11, kind: input, shape index: {}]   ;;  %s3062_s12 = inlined_call_operand.vmem [shape: f32[2,1,32], index: 12, kind: input, shape index: {}]   ;;  %s3063_s13 = inlined_call_operand.vmem [shape: f32[2,1,32], index: 13, kind: input, shape index: {}]   ;;  %s3064_s14 = inlined_call_operand.hbm [shape: f32[2,8,32], index: 14, kind: output, shape index: {0}]   ;;  %s3065_s15 = inlined_call_operand.hbm [shape: f32[4,4,8,8], index: 15, kind: output, shape index: {1}]  }
   0x1   :  { %3088 = sst [smem:[#allocation32_spill]] %s3050_s0 }
   0x2   :  { %3089 = sst [smem:[#allocation33_spill]] %s3051_s1 }
   0x3   :  { %3090 = sst [smem:[#allocation34_spill]] %s3052_s2 }
   0x4   :  { %3091 = sst [smem:[#allocation35_spill]] %s3054_s4 }
   0x5   :  { %3092 = sst [smem:[#allocation36_spill]] %s3055_s5 }
   0x6   :  { %3093 = sst [smem:[#allocation37_spill]] %s3056_s6 }
   0x7   :  { %3094 = sst [smem:[#allocation38_spill]] %s3057_s7 }
   0x8   :  { %3095 = sst [smem:[#allocation39_spill]] %s3058_s8 }
   0x9   :  { %3096 = sst [smem:[#allocation40_spill]] %s3059_s9 }
   0xa   :  { %3097 = sst [smem:[#allocation41_spill]] %s3060_s10 }
   0xb   :  { %3098 = sst [smem:[#allocation42_spill]] %s3061_s11 }
   0xc   :  { %3099 = sst [smem:[#allocation43_spill]] %s3062_s12 }
   0xd   :  { %3100 = sst [smem:[#allocation44_spill]] %s3063_s13 }
   0xe   :  { %3101 = sst [smem:[#allocation45_spill]] %s3064_s14 }
   0xf   :  { %3102 = sst [smem:[#allocation46_spill]] %s3065_s15 }
  0x10   :  { %21 = vsyncpa [#allocation3], 0 }
  0x11   :  { %23 = vsyncpa [#allocation3 + $0x1], 0 }
  0x12   :  { %24 = vsyncpa [#allocation6], 0 }
  0x13   :  { %26 = vsyncpa [#allocation6 + $0x1], 0 }
  0x14   :  { %27 = vsyncpa [#allocation4], 0 }
  0x15   :  { %29 = vsyncpa [#allocation4 + $0x1], 0 }
  0x16   :  { %30 = vsyncpa [#allocation9], 0 }
  0x17   :  { %32 = vsyncpa [#allocation9 + $0x1], 0  ;;  %s2538_s18 = smov 0   ;;  %s2540_s19 = smov 0  }
  0x18   :  { %s2542_s20 = smov 0   ;;  %s2544_s21 = smov 0  }
  0x19   :  { %s2546_s22 = smov 0   ;;  %s2548_s23 = smov 0  }
  0x1a   :  { %s2550_s24 = smov 0   ;;  %s2552_s25 = smov 0  }
  0x1b   :  { %s2554_s26 = smov 0   ;;  %s2556_s27 = smov 0  }
  0x1c   :  { %s2558_s28 = smov 0  }
  0x1d LB: > { %3103 = sst [smem:[#allocation14_spill]] %s2400_s18  ;;  %s1897_s29 = sadd.s32 4294967295, %s2440_s28   ;;  %s2440_s28 = sphi %s2558_s28, %s38_s28   ;;  %s2436_s27 = sphi %s2556_s27, %s3181_s27   ;;  %s2432_s26 = sphi %s2554_s26, %s3180_s26   ;;  %s2428_s25 = sphi %s2552_s25, %s3179_s25   ;;  %s2424_s24 = sphi %s2550_s24, %s3178_s24   ;;  %s2420_s23 = sphi %s2548_s23, %s3177_s23   ;;  %s2416_s22 = sphi %s2546_s22, %s3176_s22   ;;  %s2412_s21 = sphi %s2544_s21, %s3175_s21   ;;  %s2408_s20 = sphi %s2542_s20, %s3174_s20   ;;  %s2404_s19 = sphi %s2540_s19, %s3173_s19   ;;  %s2400_s18 = sphi %s2538_s18, %s3172_s18  }
  0x1e   : > { %3104 = sst [smem:[#allocation15_spill]] %s2404_s19  ;;  %s1898_s30 = sadd.s32 4294967294, %s2440_s28  }
  0x1f   : > { %3105 = sst [smem:[#allocation16_spill]] %s2408_s20  ;;  %s47_s16 = sadd.s32 1, %s2432_s26 }
  0x20   : > { %3106 = sst [smem:[#allocation17_spill]] %s2412_s21  ;;  %s50_s17 = sadd.s32 1, %s2436_s27 }
  0x21   : > { %3107 = sst [smem:[#allocation18_spill]] %s2416_s22  ;;  %p48_p0 = scmp.ge.s32.totalorder %s47_s16, 2 }
  0x22   : > { %3108 = sst [smem:[#allocation19_spill]] %s2420_s23  ;;  %s57_s14 = sadd.s32 1, %s2420_s23 }
  0x23   : > { %3109 = sst [smem:[#allocation20_spill]] %s2428_s25  ;;  %p64_p1 = scmp.ne.s32.totalorder %s2420_s23, %s2416_s22 }
  0x24   : > { %3110 = sst [smem:[#allocation21_spill]] %s2432_s26  ;;  %p65_p2 = scmp.eq.s32.totalorder %s2440_s28, 0 }
  0x25   : > { %3111 = sst [smem:[#allocation22_spill]] %s2436_s27  ;;  %s3183_s16 = smov (%p48_p0, %s47_s16), 0 }
  0x26   : > { %3112 = sst [smem:[#allocation23_spill]] %s2440_s28  ;;  %s3185_s17 = smov (!%p48_p0, %s50_s17), %s2436_s27 }
  0x27   : > { %3113 = sst [smem:[#allocation24_spill]] %s3183_s16  ;;  %p2604_p3 = por %p65_p2, %p64_p1 }
  0x28   : > { %p70_p4 = scmp.ne.s32.totalorder %s2416_s22, %s2412_s21  ;;  %p52_p5 = scmp.ge.s32.totalorder %s3185_s17, 2 }
  0x29   : > { %p71_p6 = scmp.eq.s32.totalorder %s1897_s29, 0  ;;  %p2610_p7 = scmp.eq.s32.totalorder %s1897_s29, 3 }
  0x2a   : > { %p2614_p8 = scmp.eq.s32.totalorder %s1898_s30, 3  ;;  %s3187_s17 = smov (%p52_p5, %s3185_s17), 0 }
  0x2b   : > { %3117 = sst [smem:[#allocation25_spill]] %s3187_s17  ;;  %p2620_p9 = por %p71_p6, %p70_p4 }
  0x2c   : > { %p2626_p10 = por %p2610_p7, %p64_p1  ;;  %s54_s30 = ssub.s32 %s2436_s27, %s3187_s17 }
  0x2d   : > { %p2634_p11 = por %p2614_p8, %p70_p4  ;;  %p55_p12 = scmp.eq.s32.totalorder %s54_s30, 0 }
  0x2e   : > { %s3119_s29 = scalar_select %p2626_p10, 1, 0 }
  0x2f   : > { %s3121_s12 = scalar_select %p2634_p11, 1, 0 }
  0x30   : > { %3120 = sst [smem:[#allocation26_spill]] %s3119_s29  ;;  %s1899_s11 = sshll.u32 %s2436_s27, 1 }
  0x31   : > { %3122 = sst [smem:[#allocation27_spill]] %s3121_s12  ;;  %s445_s10 = sadd.s32 %s2432_s26, %s1899_s11 }
  0x32   : > { %s1900_s9 = sshll.u32 %s3187_s17, 1  ;;  %s451_s6 = sadd.s32 1, %s2408_s20 }
  0x33   : > { %s2642_s8 = scalar_select %p55_p12, %s2420_s23, %s57_s14  }
  0x34   : > { %s447_s7 = sadd.s32 %s1900_s9, %s3183_s16  ;;  %p461_p13 = scmp.ne.s32.totalorder %s2408_s20, %s2404_s19 }
  0x35   : > { %3123 = sst [smem:[#allocation28_spill]] %s2642_s8  ;;  %s448_s29 = ssub.s32 %s445_s10, %s447_s7 }
  0x36   : > { %p449_p0 = scmp.eq.s32.totalorder %s448_s29, 0  ;;  %p467_p1 = scmp.ne.s32.totalorder %s2404_s19, %s2400_s18 }
  0x37   : > { %p2652_p2 = por %p461_p13, %p2610_p7  ;;  %p2098_p5 = scmp.lt.s32.totalorder %s2440_s28, 4 }
  0x38   : > { %s2657_s30 = scalar_select %p449_p0, %s2408_s20, %s451_s6  }
  0x39   : > { %s3124_s12 = scalar_select %p2652_p2, 1, 0 }
  0x3a   : > { %3126 = sst [smem:[#allocation30_spill]] %s2657_s30  ;;  %p2661_p4 = por %p467_p1, %p2614_p8 }
  0x3b   : > { %3125 = sst [smem:[#allocation29_spill]] %s3124_s12  ;;  %s2667_s9 = sand.u32 1, %s2420_s23  }
  0x3c   : > { %s3127_s11 = scalar_select %p2661_p4, 1, 0 }
  0x3d   : > { %s1904_s7 = sshll.u32 %s2436_s27, 7  ;;  %s1903_s10 = sshll.u32 %s2667_s9, 3 }
  0x3e   : > { %3128 = sst [smem:[#allocation31_spill]] %s3127_s11  ;;  %s492_s17 = scalar_lea.vmem [#allocation2], %s1903_s10 }
  0x3f   : > { %s3129_s0 = sld [smem:[#allocation32_spill]]  ;;  %s499_s16 = sshll.u32 %s492_s17, 4  ;;  %s500_s16 = int_to_ptr.vmem [resolvable:$true] %s499_s16 }
  0x40   : > { %p2676_p6 = pnand %p2098_p5, %p2604_p3  ;;  %p1906_p7 = scmp.ge.s32.totalorder %s2440_s28, 1 }
  0x41   : > { %p601_p8 = scmp.lt.s32.totalorder %s2440_s28, 5  ;;  %s489_s13 = scalar_lea.sflag [#allocation3], %s2667_s9 }
  0x42   : > { %p2232_p12 = pneg %p2676_p6  ;;  %s2243_s26 = scalar_lea.vmem %s500_s16, 128 }
  0x43   : > { %p2244_p13 = scmp.ne.s32.totalorder %s500_s16, %s2243_s26  ;;  %s2442_s17 = smov [#allocation2]  }
  0x44   : > { %s2248_s15 = sshll.u32 %s2442_s17, 4  ;;  %s2249_s15 = int_to_ptr.vmem [resolvable:$false] %s2248_s15 }
  0x45   : > { %s497_s29 = scalar_lea.hbm %s3129_s0, %s1904_s7  ;;  %p2246_p0 = pnand %p2244_p13, %p2232_p12 }
  0x46   : > { %s2250_s7 = scalar_lea.vmem %s2249_s15, 256  ;;  %p2251_p3 = scmp.lt.s32.totalorder %s500_s16, %s2249_s15 }
  0x47   : > { %p2247_p1 = pneg %p2246_p0  ;;  %p2252_p5 = scmp.lt.s32.totalorder %s2250_s7, %s2243_s26 }
  0x49   : > { %p2253_p4 = por %p2252_p5, %p2251_p3 }
  0x4b   : > { %p2254_p11 = pnand %p2253_p4, %p2247_p1 }
  0x4d   : > { %2257 = shalt.err (!%p2254_p11)
}
  0x4e   : > { %2087 = dma.hbm_to_vmem [thread:$0]  (!%p2676_p6), %s497_s29, 128, %s500_s16, %s489_s13  }
  0x4f   : > { %p2694_p13 = pnand %p1906_p7, %p601_p8  ;;  %s1905_s14 = sshll.u32 %s2436_s27, 4 }
  0x50   : > { %s3132_s1 = sld [smem:[#allocation33_spill]]  ;;  %s509_s15 = scalar_lea.vmem [#allocation5], %s2667_s9 }
  0x51   : > { %s516_s7 = sshll.u32 %s509_s15, 4  ;;  %s507_s0 = scalar_lea.sflag [#allocation6], %s2667_s9  ;;  %s517_s7 = int_to_ptr.vmem [resolvable:$true] %s516_s7 }
  0x52   : > { %s2271_s8 = scalar_lea.vmem %s517_s7, 16  ;;  %s2443_s16 = smov [#allocation5]  }
  0x53   : > { %p2272_p11 = scmp.ne.s32.totalorder %s517_s7, %s2271_s8  ;;  %s2276_s29 = sshll.u32 %s2443_s16, 4  ;;  %s2277_s29 = int_to_ptr.vmem [resolvable:$false] %s2276_s29 }
  0x54   : > { %s2278_s13 = scalar_lea.vmem %s2277_s29, 32  ;;  %p2279_p7 = scmp.lt.s32.totalorder %s517_s7, %s2277_s29 }
  0x55   : > { %p2274_p4 = pnand %p2272_p11, %p2232_p12  ;;  %p2280_p8 = scmp.lt.s32.totalorder %s2278_s13, %s2271_s8 }
  0x56   : > { %s514_s17 = scalar_lea.hbm %s3132_s1, %s1905_s14 }
  0x57   : > { %p2275_p0 = pneg %p2274_p4  ;;  %p2281_p1 = por %p2280_p8, %p2279_p7 }
  0x59   : > { %p2282_p3 = pnand %p2281_p1, %p2275_p0 }
  0x5b   : > { %2285 = shalt.err (!%p2282_p3)
}
  0x5c   : > { %2090 = dma.hbm_to_vmem [thread:$0]  (!%p2676_p6), %s514_s17, 16, %s517_s7, %s507_s0  }
  0x5d   : > { %605 = sbr.rel (%p2694_p13) target bundleno = 2616 (0xa38), region = 76  ;;  %s2712_s9 = sand.u32 (!%p2694_p13), 1, %s2416_s22  }
  0x5e   : > { %s1907_s14 = sshll.u32 (!%p2694_p13), %s2712_s9, 3  ;;  %s608_s26 = scalar_lea.sflag (!%p2694_p13), [#allocation3], %s2712_s9 }
  0x5f   : > { %s611_s25 = scalar_lea.vmem (!%p2694_p13), [#allocation2], %s1907_s14 }
  0x62   : > { %2383 = dma.done.wait (%p2620_p9), %s608_s26, 128  }
  0x63   : > { %2385 = vsyncadd (%p2620_p9), %s608_s26, 4294967168  ;;  %s617_s0 = scalar_lea.sflag [#allocation6], %s2712_s9 }
  0x64   : > { %2387 = dma.done.wait (%p2620_p9), %s617_s0, 16  }
  0x65   : > { %2389 = vsyncadd (%p2620_p9), %s617_s0, 4294967280  ;;  %s3076_s6 = sand.u32 1, %s2404_s19   ;;  %p719_p6 = scmp.lt.s32.totalorder %s2424_s24, 1 }
  0x66   : > { %s1909_s10 = sshll.u32 %s3076_s6, 5  ;;  %s3133_s2 = sld [smem:[#allocation34_spill]] }
  0x67   : > { %s2731_s17 = scalar_select %p719_p6, %s2424_s24, 1 }
  0x68   : > { %s3134_s4 = sld [smem:[#allocation35_spill]]  ;;  %s2785_s6 = scalar_lea.vmem [#allocation7], %s1907_s14 }
  0x69   : > { %s1957_s21 = sshll.u32 %s2731_s17, 4  ;;  %s3138_s13 = sld [smem:[#allocation39_spill]] }
  0x6a   : > { %s1960_s19 = sshll.u32 %s2731_s17, 5  ;;  %s3140_s23 = sld [smem:[#allocation41_spill]] }
  0x6b   : > { %s3141_s30 = sld [smem:[#allocation42_spill]]  ;;  %p1918_p9 = scmp.ne.s32.totalorder %s2424_s24, 0 }
  0x6c   : > { %s723_s26 = scalar_lea.vmem %s3133_s2, %s1957_s21  ;;  %s3142_s16 = sld [smem:[#allocation43_spill]] }
  0x6e   : > { %s2744_s8 = scalar_lea.vmem %s3134_s4, %s1957_s21  ;;  %s3139_s4 = sld [smem:[#allocation40_spill]] }
  0x6f   : > { %s2761_s2 = scalar_lea.vmem %s3138_s13, %s1957_s21  ;;  %s3143_s13 = sld [smem:[#allocation44_spill]] }
  0x70   : > { %s2771_s5 = scalar_lea.vmem %s3140_s23, %s1960_s19 }
  0x71   : > { %s756_s18 = scalar_lea.vmem %s3141_s30, %s2731_s17  ;;  %769 = sbr.rel (%p1918_p9) target bundleno = 120 (0x78), region = 88 }
  0x72   : > { %s759_s28 = scalar_lea.vmem %s3142_s16, %s2731_s17 }
  0x74   : > { %s748_s12 = scalar_lea.vmem %s3139_s4, %s2731_s17  ;;  %s2787_s4 = scalar_lea.vmem [#allocation8], %s1909_s10 }
  0x75   : > { %s762_s11 = scalar_lea.vmem %s3143_s13, %s2731_s17 }
  0x76   : > { %v770_v0 = vld [vmem:[%s611_s25] sm:$0xff]  ;;  %vm771_vm0 = vcmask 261120  }
  0x77   : > { %772 = vst.msk [vmem:[%s2785_s6] sm:$0xff] %vm771_vm0, %v770_v0 }
  0x78 PF: > { %v2200_v1 = vld [vmem:[%s723_s26 + $0x8] sm:$0xff]   ;;  %v2444_v2 = vmov 0.0   ;;  %v2201_v3 = vld [vmem:[%s723_s26] sm:$0xff]   ;;  %vm2445_vm1 = vmmov 0   ;;  %vm798_vm2 = vcmask 261120   ;;  %s3144_s14 = scalar_lea.vmem %s3053_s3, %s2731_s17  ;;  %s2446_s25 = smov 104   ;;  %v860_v27 = vlaneseq }
  0x79   : > { %1992 = vmatprep.subr.bf16.mxu0 %v2444_v2  ;;  %2000 = vmatprep.subr.bf16.mxu1 %v2444_v2  ;;  %v1919_v6 = vld [vmem:[%s3144_s14] ss:$0 sm:$0xff]  ;;  %s2447_s10 = smov 120   ;;  %s2448_s16 = smov 112   ;;  %vm868_vm3 = vcmask 64512   ;;  %vm1119_vm5 = vcmask 1043456  }
  0x7a   : > { %1993 = vmatpush3.bf16.msra.mxu0 %v2200_v1  ;;  %1996 = vmatprep.mubr.msk.bf16.mxu0 %vm2445_vm1, %v2444_v2  ;;  %s2449_s26 = smov 96   ;;  %s3145_s0 = scalar_lea.vmem [#allocation5], %s2712_s9  ;;  %v861_v29 = vshrl.u32 %v860_v27, 7  ;;  %v2450_v31 = vmov -1e+09   ;;  %vm1320_vm6 = vcmask 130048  }
  0x7b   : > { %1994 = vmatprep.subr.bf16.mxu0 %v2444_v2  ;;  %2002 = vmatprep.mubr.msk.bf16.mxu1 %vm2445_vm1, %v2444_v2  ;;  %v856_v28 = vld [vmem:[%s3145_s0] sm:$0x1]  ;;  %s2451_s1 = smov 64   ;;  %s2452_s27 = smov 8   ;;  %vm1322_vm7 = vcmask 195584   ;;  %vm1530_vm8 = vcmask 523264  }
  0x7c   : > { %vm857_vm4 = vcmp.ne.f32.partialorder %v856_v28, 0.0  ;;  %v862_v30 = vsub.s32 0, %v861_v29  ;;  %s2453_s20 = smov 16   ;;  %s2454_s22 = smov 24  }
  0x7d   : > { %v858_v32 = vsel %vm857_vm4, 0.0, %v2450_v31  ;;  %s3146_s15 = sld [smem:[#allocation36_spill]] }
  0x7e   : > { %v2796_v4 = vld [vmem:[%s2785_s6] sm:$0xff]  ;;  %1995 = vmatpush3.bf16.msra.mxu0 %v2201_v3  ;;  %v863_v33 = vrot.slane %v858_v32, %v862_v30  ;;  %s3148_s29 = sld [smem:[#allocation37_spill]] }
  0x7f   : > { %v774_v5 = vpack.c.bf16 %v2796_v4, %v2796_v4  ;;  %2006 = vmatprep.subr.bf16.mxu0 %v2444_v2  ;;  %s3150_s14 = sld [smem:[#allocation38_spill]] }
  0x80   : > { %s3157_s21 = sld [smem:[#allocation46_spill]] }
  0x81   : > { %1997 = vmatmul.mubr.msk.bf16.vlgmr.msra.gmra.mxu0 %vm798_vm2, %v774_v5 }
  0x82   : > { %2008 = vmatprep.mubr.msk.bf16.mxu0 %vm2445_vm1, %v2444_v2 }
  0x83   : > { %s3147_s7 = scalar_lea.vmem %s3146_s15, %s2731_s17  ;;  %s1639_s15 = sshll.u32 %s2787_s4, 4  ;;  %s2952_s15 = int_to_ptr.vmem [resolvable:$true] %s1639_s15 }
  0x84   : > { %s3149_s13 = scalar_lea.vmem %s3148_s29, %s2731_s17 }
  0x86   : > { %s3158_s29 = smov %s3157_s21 }
 0x141   : > { %v836_v7 = vpop.f32.mrf.mxu0 }
 0x142   : > { %v837_v8 = vadd.f32 %v1919_v6, %v836_v7 }
 0x143   : > { %v1998_v9 = vpop.f32.mrf.mxu0 }
 0x144   : > { %849 = vrot.lane.b32.xlu1 %v837_v8, %s2446_s25  ;;  %843 = vrot.lane.b32.xlu0 %v837_v8, %s2447_s10  ;;  %v2812_v11 = vpack.c.bf16 %v837_v8, %v837_v8  ;;  %s3151_s25 = scalar_lea.vmem %s3150_s14, %s2731_s17  ;;  %s2286_s14 = scalar_lea.vmem %s2952_s15, 512 }
 0x145   : > { %v839_v10 = vpop.f32.mrf.mxu0  ;;  %p2287_p12 = scmp.ne.s32.totalorder %s2952_s15, %s2286_s14 }
 0x147   : > { %v1999_v12 = vpop.f32.mrf.mxu0  ;;  %p2288_p5 = pnand %p2287_p12, %p2652_p2 }
 0x148   : > { %846 = vrot.lane.b32.xlu0 %v837_v8, %s2448_s16  ;;  %866 = vrot.lane.b32.xlu1 %v2812_v11, %s2449_s26 }
 0x149   : > { %p2289_p13 = pneg %p2288_p5 }
 0x1b6   : > { %v850_v13 = vpop.permute.xlu1 %849  ;;  %v844_v14 = vpop.permute.xlu0 %843 }
 0x1b7   : > { %v2815_v15 = vpack.c.bf16 %v844_v14, %v844_v14  ;;  %v2818_v18 = vpack.c.bf16 %v850_v13, %v850_v13 }
 0x1b9   : > { %916 = vrot.lane.b32.xlu0 %v2815_v15, %s2449_s26 }
 0x1ba   : > { %v847_v16 = vpop.permute.xlu0 %846  ;;  %v867_v17 = vpop.permute.xlu1 %866 }
 0x1bb   : > { %v2820_v19 = vpack.c.bf16 %v847_v16, %v847_v16  ;;  %v873_v20 = vsel %vm868_vm3, %v867_v17, 0 }
 0x1bc   : > { %2001 = vmatpush3.bf16.xpose.msra.mxu1 %v873_v20 }
 0x1bd   : > { %1014 = vrot.lane.b32.xlu0 %v2818_v18, %s2449_s26  ;;  %965 = vrot.lane.b32.xlu1 %v2820_v19, %s2449_s26 }
 0x1be   : > { %2012 = vmatprep.subr.bf16.mxu1 %v2444_v2 }
 0x1c3   : > { %2003 = vmatmul.mubr.msk.bf16.vlgmr.msra.gmra.mxu1 %vm868_vm3, %v2812_v11 }
 0x1c4   : > { %2014 = vmatprep.mubr.msk.bf16.mxu1 %vm2445_vm1, %v2444_v2 }
 0x22b   : > { %v917_v21 = vpop.permute.xlu0 %916 }
 0x22c   : > { %v922_v22 = vsel %vm868_vm3, %v917_v21, 0 }
 0x22d   : > { %2007 = vmatpush3.bf16.xpose.msra.mxu0 %v922_v22 }
 0x22e   : > { %2018 = vmatprep.subr.bf16.mxu0 %v2444_v2 }
 0x22f   : > { %v966_v23 = vpop.permute.xlu1 %965  ;;  %v1015_v25 = vpop.permute.xlu0 %1014 }
 0x230   : > { %v971_v24 = vsel %vm868_vm3, %v966_v23, 0  ;;  %v1020_v26 = vsel %vm868_vm3, %v1015_v25, 0 }
 0x231   : > { %2013 = vmatpush3.bf16.xpose.msra.mxu1 %v971_v24 }
 0x232   : > { %2024 = vmatprep.subr.bf16.mxu1 %v2444_v2 }
 0x234   : > { %2009 = vmatmul.mubr.msk.bf16.vlgmr.msra.gmra.mxu0 %vm868_vm3, %v2815_v15 }
 0x235   : > { %2019 = vmatpush3.bf16.xpose.msra.mxu0 %v1020_v26  ;;  %2020 = vmatprep.mubr.msk.bf16.mxu0 %vm2445_vm1, %v2444_v2 }
 0x236   : > { %2030 = vmatprep.subr.bf16.mxu0 %v2444_v2 }
 0x238   : > { %2015 = vmatmul.mubr.msk.bf16.vlgmr.msra.gmra.mxu1 %vm868_vm3, %v2820_v19 }
 0x239   : > { %2026 = vmatprep.mubr.msk.bf16.mxu1 %vm2445_vm1, %v2444_v2 }
 0x23c   : > { %2021 = vmatmul.mubr.msk.bf16.vlgmr.msra.gmra.mxu0 %vm868_vm3, %v2818_v18 }
 0x23d   : > { %2032 = vmatprep.mubr.msk.bf16.mxu0 %vm2445_vm1, %v2444_v2 }
 0x283   : > { %v909_v34 = vpop.f32.mrf.mxu1 }
 0x284   : > { %v910_v35 = vadd.f32 %v909_v34, %v863_v33 }
 0x285   : > { %v2004_v36 = vpop.f32.mrf.mxu1 }
 0x286   : > { %v1062_v37 = vsel %vm868_vm3, %v910_v35, -inf }
 0x287   : > { %1063 = vmax.xlane.f32.xlu1 %v1062_v37  ;;  %v912_v38 = vpop.f32.mrf.mxu1 }
 0x289   : > { %v2005_v39 = vpop.f32.mrf.mxu1 }
 0x2f4   : > { %v958_v40 = vpop.f32.mrf.mxu0 }
 0x2f5   : > { %v959_v41 = vadd.f32 %v958_v40, %v863_v33 }
 0x2f6   : > { %v2010_v42 = vpop.f32.mrf.mxu0 }
 0x2f7   : > { %v1065_v43 = vsel %vm868_vm3, %v959_v41, -inf }
 0x2f8   : > { %v1007_v44 = vpop.f32.mrf.mxu1  ;;  %1066 = vmax.xlane.f32.xlu0 %v1065_v43  ;;  %v961_v45 = vpop.f32.mrf.mxu0 }
 0x2f9   : > { %v1008_v46 = vadd.f32 %v1007_v44, %v863_v33  ;;  %v2202_v44 = vld [vmem:[%s2744_s8 + $0x8] sm:$0xff]   ;;  %v2203_v45 = vld [vmem:[%s2744_s8] sm:$0xff]  }
 0x2fa   : > { %v2011_v47 = vpop.f32.mrf.mxu0  ;;  %v2016_v48 = vpop.f32.mrf.mxu1 }
 0x2fb   : > { %v1068_v49 = vsel %vm868_vm3, %v1008_v46, -inf }
 0x2fc   : > { %v1010_v50 = vpop.f32.mrf.mxu1  ;;  %1069 = vmax.xlane.f32.xlu0 %v1068_v49  ;;  %v1056_v51 = vpop.f32.mrf.mxu0 }
 0x2fd   : > { %v1057_v52 = vadd.f32 %v1056_v51, %v863_v33 }
 0x2fe   : > { %v2017_v53 = vpop.f32.mrf.mxu1  ;;  %v2022_v54 = vpop.f32.mrf.mxu0 }
 0x2ff   : > { %v1071_v55 = vsel %vm868_vm3, %v1057_v52, -inf }
 0x300   : > { %1072 = vmax.xlane.f32.xlu1 %v1071_v55  ;;  %v1059_v56 = vpop.f32.mrf.mxu0 }
 0x302   : > { %v2023_v57 = vpop.f32.mrf.mxu0 }
 0x310   : > { %v1064_v58 = vpop.xlane.xlu1 %1063 }
 0x311   : > { %1163 = vrot.lane.b32.xlu1 %v2815_v15, %s2451_s1  ;;  %v1074_v59 = vsub.f32 %v910_v35, %v1064_v58 }
 0x312   : > { %1114 = vrot.lane.b32.xlu0 %v2812_v11, %s2451_s1 }
 0x313   : > { %v1078_v60 = vmul.f32 1.442695, %v1074_v59 }
 0x315   : > { %2210 = vpow2.f32 %v1078_v60 }
 0x322   : > { %v2211_v61 = vpop.eup %2210 }
 0x323   : > { %v1086_v62 = vsel %vm868_vm3, %v2211_v61, 0.0 }
 0x331   : > { %1087 = vadd.xlane.f32.xlu0 %v1086_v62 }
 0x381   : > { %v1067_v63 = vpop.xlane.xlu0 %1066 }
 0x382   : > { %v1075_v0 = vsub.f32 %v959_v41, %v1067_v63 }
 0x384   : > { %v1080_v1 = vmul.f32 1.442695, %v1075_v0 }
 0x385   : > { %v1070_v3 = vpop.xlane.xlu0 %1069 }
 0x386   : > { %2212 = vpow2.f32 %v1080_v1  ;;  %v1076_v5 = vsub.f32 %v1008_v46, %v1070_v3  ;;  %v1931_v1 = vld [vmem:[%s3147_s7] ss:$0 sm:$0xff] }
 0x388   : > { %v1082_v6 = vmul.f32 1.442695, %v1076_v5 }
 0x389   : > { %v1115_v7 = vpop.permute.xlu0 %1114  ;;  %v1073_v8 = vpop.xlane.xlu1 %1072 }
 0x38a   : > { %2214 = vpow2.f32 %v1082_v6  ;;  %v1121_v9 = vsel %vm1119_vm5, %v1115_v7, 0  ;;  %v1077_v10 = vsub.f32 %v1057_v52, %v1073_v8 }
 0x38b   : > { %2025 = vmatpush3.bf16.msra.mxu1 %v1121_v9 }
 0x38c   : > { %v1084_v11 = vmul.f32 1.442695, %v1077_v10  ;;  %2036 = vmatprep.subr.bf16.mxu1 %v2444_v2 }
 0x38d   : > { %v1164_v12 = vpop.permute.xlu1 %1163 }
 0x38e   : > { %2216 = vpow2.f32 %v1084_v11  ;;  %v1169_v13 = vsel %vm1119_vm5, %v1164_v12, 0 }
 0x38f   : > { %2031 = vmatpush3.bf16.msra.mxu0 %v1169_v13 }
 0x390   : > { %2042 = vmatprep.subr.bf16.mxu0 %v2444_v2 }
 0x393   : > { %v2213_v14 = vpop.eup %2212 }
 0x394   : > { %v1089_v15 = vsel %vm868_vm3, %v2213_v14, 0.0 }
 0x395   : > { %1090 = vadd.xlane.f32.xlu1 %v1089_v15 }
 0x397   : > { %v2215_v16 = vpop.eup %2214 }
 0x398   : > { %v1092_v17 = vsel %vm868_vm3, %v2215_v16, 0.0 }
 0x399   : > { %1093 = vadd.xlane.f32.xlu0 %v1092_v17  ;;  %v2205_v17 = vld [vmem:[%s2761_s2] sm:$0xff]  }
 0x39b   : > { %v2217_v20 = vpop.eup %2216 }
 0x39c   : > { %v1095_v21 = vsel %vm868_vm3, %v2217_v20, 0.0 }
 0x39d   : > { %1096 = vadd.xlane.f32.xlu1 %v1095_v21 }
 0x3ae   : > { %1211 = vrot.lane.b32.xlu1 %v2820_v19, %s2451_s1 }
 0x3af   : > { %1259 = vrot.lane.b32.xlu0 %v2818_v18, %s2451_s1 }
 0x3ba   : > { %v1088_v22 = vpop.xlane.xlu0 %1087 }
 0x3bb   : > { %2218 = vrcp.f32 %v1088_v22 }
 0x3c8   : > { %v2219_v23 = vpop.eup %2218 }
 0x3c9   : > { %v1102_v24 = vmul.f32 %v2219_v23, %v2211_v61 }
 0x3cb   : > { %1106 = vst.msk [vmem:[%s2787_s4] sm:$0xff] %vm868_vm3, %v1102_v24  ;;  %v1110_v25 = vpack.c.bf16 %v1102_v24, %v1102_v24 }
 0x3cd   : > { %2027 = vmatmul.mubr.msk.bf16.vlgmr.msra.gmra.mxu1 %vm868_vm3, %v1110_v25  ;;  %v1935_v25 = vld [vmem:[%s3149_s13] ss:$0 sm:$0xff] }
 0x3ce   : > { %2038 = vmatprep.mubr.msk.bf16.mxu1 %vm2445_vm1, %v2444_v2 }
 0x41e   : > { %v1091_v26 = vpop.xlane.xlu1 %1090 }
 0x41f   : > { %2220 = vrcp.f32 %v1091_v26 }
 0x422   : > { %v1094_v27 = vpop.xlane.xlu0 %1093 }
 0x423   : > { %2222 = vrcp.f32 %v1094_v27  ;;  %v1936_v27 = vld [vmem:[%s3151_s25] ss:$0 sm:$0xff] }
 0x426   : > { %v1097_v19 = vpop.xlane.xlu1 %1096  ;;  %v1260_v31 = vpop.permute.xlu0 %1259 }
 0x427   : > { %2224 = vrcp.f32 %v1097_v19  ;;  %v1265_v34 = vsel %vm1119_vm5, %v1260_v31, 0  ;;  %v1937_v31 = vld [vmem:[%s748_s12] ss:$0 sm:$0xff]  ;;  %s3155_s12 = sld [smem:[#allocation15_spill]] }
 0x42a   : > { %v1212_v18 = vpop.permute.xlu1 %1211 }
 0x42b   : > { %v1217_v28 = vsel %vm1119_vm5, %v1212_v18, 0 }
 0x42c   : > { %v2221_v29 = vpop.eup %2220  ;;  %2037 = vmatpush3.bf16.msra.mxu1 %v1217_v28 }
 0x42d   : > { %v1103_v30 = vmul.f32 %v2221_v29, %v2213_v14  ;;  %2048 = vmatprep.subr.bf16.mxu1 %v2444_v2  ;;  %v2208_v29 = vld [vmem:[%s2771_s5 + $0x8] sm:$0xff]   ;;  %s3159_s19 = sand.u32 1, %s3155_s12  }
 0x42e   : > { %s2956_s23 = scalar_lea.sflag [#allocation9], %s3159_s19 }
 0x42f   : > { %1107 = vst.msk [vmem:[%s2787_s4 + $0x8] sm:$0xff] %vm868_vm3, %v1103_v30  ;;  %v1111_v32 = vpack.c.bf16 %v1103_v30, %v1103_v30  ;;  %v2209_v30 = vld [vmem:[%s2771_s5] sm:$0xff]  }
 0x430   : > { %v2223_v33 = vpop.eup %2222 }
 0x431   : > { %2033 = vmatmul.mubr.msk.bf16.vlgmr.msra.gmra.mxu0 %vm868_vm3, %v1111_v32  ;;  %v1104_v35 = vmul.f32 %v2223_v33, %v2215_v16  ;;  %v2204_v16 = vld [vmem:[%s2761_s2 + $0x8] sm:$0xff]  }
 0x432   : > { %2043 = vmatpush3.bf16.msra.mxu0 %v1265_v34  ;;  %2044 = vmatprep.mubr.msk.bf16.mxu0 %vm2445_vm1, %v2444_v2 }
 0x433   : > { %1108 = vst.msk [vmem:[%s2787_s4 + $0x10] sm:$0xff] %vm868_vm3, %v1104_v35  ;;  %v1112_v36 = vpack.c.bf16 %v1104_v35, %v1104_v35  ;;  %2056 = vmatprep.subr.bf16.mxu0 %v2444_v2 }
 0x434   : > { %v2225_v37 = vpop.eup %2224 }
 0x435   : > { %2039 = vmatmul.mubr.msk.bf16.vlgmr.msra.gmra.mxu1 %vm868_vm3, %v1112_v36  ;;  %v1105_v38 = vmul.f32 %v2225_v37, %v2217_v20  ;;  %v2207_v20 = vld [vmem:[%s2771_s5 + $0x10] sm:$0xff]  }
 0x436   : > { %2052 = vmatprep.mubr.msk.bf16.mxu1 %vm2445_vm1, %v2444_v2  ;;  %2049 = vmatpush3.bf16.msra.mxu1 %v2202_v44 }
 0x437   : > { %1109 = vst.msk [vmem:[%s2787_s4 + $0x18] sm:$0xff] %vm868_vm3, %v1105_v38  ;;  %v1113_v39 = vpack.c.bf16 %v1105_v38, %v1105_v38  ;;  %2050 = vmatprep.subr.bf16.mxu1 %v2444_v2 }
 0x439   : > { %2045 = vmatmul.mubr.msk.bf16.vlgmr.msra.gmra.mxu0 %vm868_vm3, %v1113_v39 }
 0x43a   : > { %2060 = vmatprep.mubr.msk.bf16.mxu0 %vm2445_vm1, %v2444_v2  ;;  %2051 = vmatpush3.bf16.msra.mxu1 %v2203_v45 }
 0x43b   : > { %2064 = vmatprep.subr.bf16.mxu1 %v2444_v2  ;;  %2057 = vmatpush3.bf16.msra.mxu0 %v2204_v16 }
 0x43c   : > { %2058 = vmatprep.subr.bf16.mxu0 %v2444_v2 }
 0x43f   : > { %2059 = vmatpush3.bf16.msra.mxu0 %v2205_v17 }
 0x48d   : > { %v1157_v40 = vpop.f32.mrf.mxu1 }
 0x48f   : > { %v2028_v41 = vpop.f32.mrf.mxu1 }
 0x491   : > { %v1160_v42 = vpop.f32.mrf.mxu1 }
 0x493   : > { %v2029_v43 = vpop.f32.mrf.mxu1 }
 0x4f1   : > { %v1205_v46 = vpop.f32.mrf.mxu0 }
 0x4f2   : > { %1308 = vrot.lane.b32.xlu1 %v1205_v46, %s2452_s27 }
 0x4f3   : > { %v2034_v47 = vpop.f32.mrf.mxu0 }
 0x4f5   : > { %v1208_v48 = vpop.f32.mrf.mxu0  ;;  %v1253_v49 = vpop.f32.mrf.mxu1 }
 0x4f6   : > { %1312 = vrot.lane.b32.xlu0 %v1253_v49, %s2453_s20 }
 0x4f7   : > { %v2035_v50 = vpop.f32.mrf.mxu0  ;;  %v2040_v51 = vpop.f32.mrf.mxu1 }
 0x4f9   : > { %v1256_v52 = vpop.f32.mrf.mxu1  ;;  %v1301_v53 = vpop.f32.mrf.mxu0 }
 0x4fa   : > { %1316 = vrot.lane.b32.xlu1 %v1301_v53, %s2454_s22 }
 0x4fb   : > { %v2041_v54 = vpop.f32.mrf.mxu1  ;;  %v2046_v55 = vpop.f32.mrf.mxu0 }
 0x4fd   : > { %v1304_v56 = vpop.f32.mrf.mxu0 }
 0x4ff   : > { %v2047_v57 = vpop.f32.mrf.mxu0 }
 0x564   : > { %v1309_v58 = vpop.permute.xlu1 %1308 }
 0x565   : > { %v1319_v60 = vsel %vm868_vm3, %v1157_v40, %v1309_v58 }
 0x568   : > { %v1313_v59 = vpop.permute.xlu0 %1312 }
 0x569   : > { %v1321_v61 = vsel %vm1320_vm6, %v1319_v60, %v1313_v59 }
 0x56c   : > { %v1317_v62 = vpop.permute.xlu1 %1316 }
 0x56d   : > { %v1323_v63 = vsel %vm1322_vm7, %v1321_v61, %v1317_v62 }
 0x56e   : > { %v1324_v0 = vpack.c.bf16 %v1323_v63, %v1323_v63 }
 0x570   : > { %2053 = vmatmul.mubr.msk.bf16.vlgmr.msra.gmra.mxu1 %vm798_vm2, %v1324_v0 }
 0x571   : > { %2072 = vmatprep.mubr.msk.bf16.mxu1 %vm2445_vm1, %v2444_v2 }
 0x630   : > { %v1385_v3 = vpop.f32.mrf.mxu1 }
 0x631   : > { %v1386_v5 = vadd.f32 %v1931_v1, %v1385_v3 }
 0x632   : > { %v2054_v6 = vpop.f32.mrf.mxu1 }
 0x633   : > { %v1391_v7 = vadd.f32 %v1386_v5, %v2796_v4  ;;  %v2206_v4 = vld [vmem:[%s2771_s5 + $0x18] sm:$0xff]   ;;  %s3154_s5 = sld [smem:[#allocation20_spill]] }
 0x634   : > { %v1388_v8 = vpop.f32.mrf.mxu1  ;;  %2065 = vmatpush3.bf16.msra.mxu1 %v2206_v4 }
 0x635   : > { %v1392_v9 = vsel %vm798_vm2, %v1391_v7, 0.0  ;;  %2066 = vmatprep.subr.bf16.mxu1 %v2444_v2 }
 0x636   : > { %1393 = vadd.xlane.f32.xlu0 %v1392_v9  ;;  %v2055_v10 = vpop.f32.mrf.mxu1 }
 0x638   : > { %2067 = vmatpush3.bf16.msra.mxu1 %v2207_v20 }
 0x639   : > { %2068 = vmatprep.subr.bf16.mxu1 %v2444_v2 }
 0x63c   : > { %2069 = vmatpush3.bf16.msra.mxu1 %v2208_v29 }
 0x63d   : > { %2070 = vmatprep.subr.bf16.mxu1 %v2444_v2  ;;  %v1941_v2 = vld [vmem:[%s756_s18] ss:$0 sm:$0xff]  ;;  %s1952_s18 = sshll.u32 %s3154_s5, 1 }
 0x63e   : > { %s1632_s8 = sadd.s32 %s2424_s24, %s1952_s18  ;;  %s2455_s24 = smov [#allocation8]  }
 0x63f   : > { %s1961_s30 = sshll.u32 %s1632_s8, 9  ;;  %s2290_s4 = sshll.u32 %s2455_s24, 4  ;;  %s2291_s4 = int_to_ptr.vmem [resolvable:$false] %s2290_s4 }
 0x640   : > { %2071 = vmatpush3.bf16.msra.mxu1 %v2209_v30  ;;  %s2950_s13 = scalar_lea.hbm %s3157_s21, %s1961_s30  ;;  %s2292_s25 = scalar_lea.vmem %s2291_s4, 1024 }
 0x641   : > { %p2293_p11 = scmp.lt.s32.totalorder %s2952_s15, %s2291_s4  ;;  %p2294_p4 = scmp.lt.s32.totalorder %s2292_s25, %s2286_s14 }
 0x643   : > { %p2295_p0 = por %p2294_p4, %p2293_p11 }
 0x645   : > { %p2296_p7 = pnand %p2295_p0, %p2289_p13 }
 0x6bf   : > { %v1394_v11 = vpop.xlane.xlu0 %1393 }
 0x6c0   : > { %v1396_v12 = vmul.f32 0.03125, %v1394_v11 }
 0x6c2   : > { %v1397_v13 = vsub.f32 %v1391_v7, %v1396_v12 }
 0x6c4   : > { %v1398_v14 = vmul.f32 %v1397_v13, %v1397_v13 }
 0x6c6   : > { %v1399_v15 = vsel %vm798_vm2, %v1398_v14, 0.0 }
 0x6c7   : > { %1400 = vadd.xlane.f32.xlu1 %v1399_v15 }
 0x750   : > { %v1401_v21 = vpop.xlane.xlu1 %1400 }
 0x751   : > { %v1402_v22 = vmul.f32 0.03125, %v1401_v21 }
 0x753   : > { %v1403_v23 = vadd.f32 1e-05, %v1402_v22 }
 0x755   : > { %2226 = vrsqrt.f32 %v1403_v23 }
 0x762   : > { %v2227_v24 = vpop.eup %2226 }
 0x763   : > { %v1405_v26 = vmul.f32 %v2227_v24, %v1397_v13 }
 0x765   : > { %v1413_v19 = vmul.f32 %v1935_v25, %v1405_v26 }
 0x767   : > { %v1421_v18 = vadd.f32 %v1936_v27, %v1413_v19 }
 0x769   : > { %v1422_v28 = vpack.c.bf16 %v1421_v18, %v1421_v18 }
 0x76b   : > { %2061 = vmatmul.mubr.msk.bf16.vlgmr.msra.gmra.mxu0 %vm798_vm2, %v1422_v28 }
 0x82b   : > { %v1483_v32 = vpop.f32.mrf.mxu0 }
 0x82c   : > { %v1484_v33 = vadd.f32 %v1937_v31, %v1483_v32 }
 0x82d   : > { %v2062_v34 = vpop.f32.mrf.mxu0 }
 0x82e   : > { %v1489_v35 = vmax.f32 %v1484_v33, 0.0 }
 0x82f   : > { %v1486_v36 = vpop.f32.mrf.mxu0 }
 0x830   : > { %v1490_v37 = vpack.c.bf16 %v1489_v35, %v1489_v35 }
 0x831   : > { %v2063_v38 = vpop.f32.mrf.mxu0 }
 0x832   : > { %2073 = vmatmul.mubr.msk.bf16.vlgmr.msra.gmra.mxu1 %vm1530_vm8, %v1490_v37 }
 0x8f2   : > { %v1568_v39 = vpop.f32.mrf.mxu1 }
 0x8f3   : > { %v1569_v40 = vadd.f32 %v1941_v2, %v1568_v39 }
 0x8f4   : > { %v2074_v41 = vpop.f32.mrf.mxu1 }
 0x8f5   : > { %v1574_v42 = vadd.f32 %v1569_v40, %v1421_v18 }
 0x8f6   : > { %v1571_v43 = vpop.f32.mrf.mxu1 }
 0x8f7   : > { %v1575_v44 = vsel %vm798_vm2, %v1574_v42, 0.0 }
 0x8f8   : > { %1576 = vadd.xlane.f32.xlu0 %v1575_v44  ;;  %v2075_v45 = vpop.f32.mrf.mxu1 }
 0x981   : > { %v1577_v46 = vpop.xlane.xlu0 %1576 }
 0x982   : > { %v1578_v47 = vmul.f32 0.03125, %v1577_v46 }
 0x984   : > { %v1579_v48 = vsub.f32 %v1574_v42, %v1578_v47 }
 0x986   : > { %v1580_v49 = vmul.f32 %v1579_v48, %v1579_v48 }
 0x988   : > { %v1581_v50 = vsel %vm798_vm2, %v1580_v49, 0.0 }
 0x989   : > { %1582 = vadd.xlane.f32.xlu0 %v1581_v50 }
 0x98a   : > { %2299 = shalt.err (!%p2296_p7)
}
 0x98b   : > { %s2300_s10 = scalar_lea.hbm %s2950_s13, 512  ;;  %s2304_s0 = scalar_lea.hbm %s3158_s29, 2048 }
 0x98c   : > { %p2301_p8 = scmp.ne.s32.totalorder %s2950_s13, %s2300_s10  ;;  %p2305_p6 = scmp.lt.s32.totalorder %s2950_s13, %s3158_s29 }
 0x98d   : > { %p2306_p9 = scmp.lt.s32.totalorder %s2304_s0, %s2300_s10 }
 0x98e   : > { %p2302_p1 = pnand %p2301_p8, %p2652_p2 }
 0x98f   : > { %p2307_p12 = por %p2306_p9, %p2305_p6 }
 0x990   : > { %p2303_p3 = pneg %p2302_p1 }
 0x992   : > { %p2308_p5 = pnand %p2307_p12, %p2303_p3 }
 0x994   : > { %2311 = shalt.err (!%p2308_p5)
}
 0x995   : > { %s2456_s12 = smov 128   ;;  %v1947_v55 = vld [vmem:[%s759_s28] ss:$0 sm:$0xff]  ;;  %s1951_s19 = sshll.u32 %s3154_s5, 7 }
 0x996   : > { %2081 = dma.vmem_to_hbm [thread:$0]  (%p2652_p2), %s2952_s15, 512, %s2950_s13, %s2956_s23, %s2456_s12, %s2456_s12, %s2452_s27  }
 0x997   : > { %v1948_v57 = vld [vmem:[%s762_s11] ss:$0 sm:$0xff]  ;;  %s1624_s27 = sshll.u32 %s2785_s6, 4  ;;  %s3163_s23 = sld [smem:[#allocation45_spill]]  ;;  %s1625_s27 = int_to_ptr.vmem [resolvable:$true] %s1624_s27 }
 0x998   : > { %s1606_s4 = scalar_lea.sflag [#allocation4], %s2712_s9  ;;  %s2312_s25 = scalar_lea.vmem %s1625_s27, 128 }
 0x999   : > { %p2313_p2 = scmp.ne.s32.totalorder %s1625_s27, %s2312_s25  ;;  %s2457_s28 = smov [#allocation7]  }
 0x99a   : > { %s2316_s17 = sshll.u32 %s2457_s28, 4  ;;  %s2317_s17 = int_to_ptr.vmem [resolvable:$false] %s2316_s17 }
 0x99b   : > { %p2314_p13 = pnand %p2313_p2, %p2626_p10  ;;  %s2318_s11 = scalar_lea.vmem %s2317_s17, 256 }
 0x99c   : > { %p2319_p4 = scmp.lt.s32.totalorder %s1625_s27, %s2317_s17  ;;  %p2320_p0 = scmp.lt.s32.totalorder %s2318_s11, %s2312_s25 }
 0x99d   : > { %s3164_s14 = smov %s3163_s23  ;;  %s1622_s24 = scalar_lea.hbm %s3163_s23, %s1951_s19 }
 0x99e   : > { %p2315_p11 = pneg %p2314_p13  ;;  %p2321_p7 = por %p2320_p0, %p2319_p4 }
 0x9a0   : > { %p2322_p8 = pnand %p2321_p7, %p2315_p11 }
 0xa12   : > { %v1583_v51 = vpop.xlane.xlu0 %1582 }
 0xa13   : > { %v1584_v52 = vmul.f32 0.03125, %v1583_v51 }
 0xa15   : > { %v1585_v53 = vadd.f32 1e-05, %v1584_v52 }
 0xa17   : > { %2228 = vrsqrt.f32 %v1585_v53 }
 0xa24   : > { %v2229_v54 = vpop.eup %2228 }
 0xa25   : > { %v1587_v56 = vmul.f32 %v2229_v54, %v1579_v48 }
 0xa27   : > { %v1595_v58 = vmul.f32 %v1947_v55, %v1587_v56 }
 0xa29   : > { %v1603_v59 = vadd.f32 %v1948_v57, %v1595_v58 }
 0xa2b   : > { %1604 = vst.msk [vmem:[%s2785_s6] sm:$0xff] %vm798_vm2, %v1603_v59 }
 0xa2c   : > { %2325 = shalt.err (!%p2322_p8)
}
 0xa2d   : > { %s2326_s5 = scalar_lea.hbm %s1622_s24, 128  ;;  %s2330_s10 = scalar_lea.hbm %s3164_s14, 256 }
 0xa2e   : > { %p2327_p1 = scmp.ne.s32.totalorder %s1622_s24, %s2326_s5  ;;  %p2331_p9 = scmp.lt.s32.totalorder %s1622_s24, %s3164_s14 }
 0xa2f   : > { %p2332_p12 = scmp.lt.s32.totalorder %s2330_s10, %s2326_s5 }
 0xa30   : > { %p2328_p3 = pnand %p2327_p1, %p2626_p10 }
 0xa31   : > { %p2333_p5 = por %p2332_p12, %p2331_p9 }
 0xa32   : > { %p2329_p6 = pneg %p2328_p3 }
 0xa34   : > { %p2334_p2 = pnand %p2333_p5, %p2329_p6 }
 0xa36   : > { %2337 = shalt.err (!%p2334_p2)
}
 0xa37   : > { %2080 = dma.vmem_to_hbm [thread:$0]  (%p2626_p10), %s1625_s27, 128, %s1622_s24, %s1606_s4  }
 0xa38 PF: > { %s3165_s0 = sld [smem:[#allocation23_spill]] }
 0xa39   : > { %s3166_s1 = sld [smem:[#allocation17_spill]] }
 0xa3a   : > { %s3167_s20 = sld [smem:[#allocation27_spill]] }
 0xa3e   : > { %p2099_p13 = scmp.ge.s32.totalorder %s3165_s0, 2 }
 0xa3f   : > { %s1654_s12 = sand.u32 1, %s3166_s1  }
 0xa40   : > { %p3168_p11 = scmp.ne.s32.totalorder %s3167_s20, 0  ;;  %s1655_s8 = scalar_lea.sflag [#allocation4], %s1654_s12 }
 0xa42   : > { %p2092_p4 = pnand %p2099_p13, %p3168_p11 }
 0xa44   : > { %p2093_p0 = pneg %p2092_p4 }
 0xa46   : > { %2391 = dma.done.wait (%p2093_p0), %s1655_s8, 128  }
 0xa47   : > { %2393 = vsyncadd (%p2093_p0), %s1655_s8, 4294967168  ;;  %s3169_s30 = sld [smem:[#allocation14_spill]] }
 0xa48   : > { %s3170_s22 = sld [smem:[#allocation31_spill]] }
 0xa4d   : > { %s1663_s7 = sand.u32 1, %s3169_s30  }
 0xa4e   : > { %p3171_p7 = scmp.ne.s32.totalorder %s3170_s22, 0  ;;  %s1664_s18 = scalar_lea.sflag [#allocation9], %s1663_s7 }
 0xa50   : > { %p2095_p8 = pnand %p2099_p13, %p3171_p7 }
 0xa52   : > { %p2096_p1 = pneg %p2095_p8 }
 0xa54   : > { %2395 = dma.done.wait (%p2096_p1), %s1664_s18, 512  }
 0xa55   : > { %2397 = vsyncadd (%p2096_p1), %s1664_s18, 4294966784  ;;  %s38_s28 = sadd.s32 1, %s3165_s0   ;;  %s3172_s18 = sld [smem:[#allocation15_spill]] }
 0xa56   : > { %p35_p10 = scmp.ge.s32.totalorder %s38_s28, 6   ;;  %s3173_s19 = sld [smem:[#allocation16_spill]] }
 0xa57   : > { %s3174_s20 = sld [smem:[#allocation30_spill]] }
 0xa58   : > { %s3175_s21 = sld [smem:[#allocation18_spill]] }
 0xa59   : > { %s3176_s22 = sld [smem:[#allocation19_spill]] }
 0xa5a   : > { %s3177_s23 = sld [smem:[#allocation28_spill]]  ;;  %37 = sbr.rel (!%p35_p10) target bundleno = 29 (0x1d), region = 191 }
 0xa5b   : > { %s3178_s24 = sld [smem:[#allocation21_spill]] }
 0xa5c   : > { %s3179_s25 = sld [smem:[#allocation22_spill]] }
 0xa5d   : > { %s3180_s26 = sld [smem:[#allocation24_spill]] }
 0xa5e   : > { %s3181_s27 = sld [smem:[#allocation25_spill]] }
 0xa5f   :  { %1669 = vsyncpa [#allocation3], 1 }
 0xa60   :  { %1671 = vsyncpa [#allocation3 + $0x1], 1 }
 0xa61   :  { %1672 = vsyncpa [#allocation6], 1 }
 0xa62   :  { %1674 = vsyncpa [#allocation6 + $0x1], 1 }
 0xa63   :  { %1675 = vsyncpa [#allocation4], 1 }
 0xa64   :  { %1677 = vsyncpa [#allocation4 + $0x1], 1 }
 0xa65   :  { %1678 = vsyncpa [#allocation9], 1 }
 0xa66   :  { %1680 = vsyncpa [#allocation9 + $0x1], 1 }

</bundles_post_ra>
